<compile_context>
chip_gen: v5e
topology: v5e:2x2
jax: 0.10.0
libtpu: 0.0.40
codegen_flags: <defaults>
</compile_context>

<pallas_src>
import functools

import jax
import jax.numpy as jnp
from jax.experimental import pallas as pl
from jax.experimental.pallas import tpu as pltpu

LEAK = 0.1


def _fused_aux_encoder_kernel(xph_ref, B1_ref, b1_ref, B2_ref, b2_ref,
                              B3_ref, b3_ref,
                              out1_ref, out2_ref, out3_ref,
                              q1_ref, q2_ref, pt1_ref, pt2_ref, pt3_ref):
    """All three conv(k3,s2,p1) + LeakyReLU(0.1) layers in one invocation.

    Layouts (all "row-flat": rows = spatial rows, lanes = width*channels):
      xph_ref : (8, N, H/8+1, W*Cin)          f32  row-phase-grouped, row-padded x
      Bl_ref  : (3*Win_l*Cin_l, Wout_l*Cout_l) bf16 conv lowered to a matmul
      bl_ref  : (1, Wout_l*Cout_l)            f32  bias tiled over the flat row
      outl_ref: (N*Hout_l, Wout_l*Cout_l)     f32  rows ordered (row-phase, n, row)
      q1_ref  : (4, N, Ho1/4+1, Wo1*C1)       f32  y1 in 4 row-phase groups (padded)
      q2_ref  : (2, N, Ho2/2+1, Wo2*C2)       f32  y2 in 2 row-phase groups (padded)
      ptl_ref : per-layer im2row patch scratch, bf16 (single K=3*Win*Cin dot)
    """
    N = xph_ref.shape[1]
    K1 = xph_ref.shape[3]                      # W * Cin
    M1, L1 = out1_ref.shape
    M2, L2 = out2_ref.shape
    M3, L3 = out3_ref.shape
    Ho1, Ho2, Ho3 = M1 // N, M2 // N, M3 // N
    hh1, hh2, hh3 = Ho1 // 4, Ho2 // 2, Ho3    # rows per (phase, n) block
    K2, K3 = L1, L2                            # flat widths of y1, y2

    # Top/bottom zero-padding rows of y1/y2 live in the q scratches.
    q1_ref[...] = jnp.zeros_like(q1_ref)
    q2_ref[...] = jnp.zeros_like(q2_ref)

    def leaky(v):
        return jnp.where(v >= 0, v, LEAK * v)

    # ---------------- layer 1 ----------------
    # Patch rows ordered (a = out_row % 4, n, i2 = out_row // 4); every dy tap is a
    # contiguous row slab of one of the 8 input row-phase groups.
    for a in range(4):
        for dy in range(3):
            s = 2 * a + dy
            for n in range(N):
                r0 = (a * N + n) * hh1
                pt1_ref[r0:r0 + hh1, dy * K1:(dy + 1) * K1] = (
                    xph_ref[s % 8, n, s // 8:s // 8 + hh1, :].astype(jnp.bfloat16))
    acc1 = jnp.dot(pt1_ref[...], B1_ref[...],
                   preferred_element_type=jnp.float32) + b1_ref[...]
    y1 = leaky(acc1)
    out1_ref[...] = y1
    # Scatter y1 into its 4 row-phase groups (contiguous slabs) for layer 2.
    for a in range(4):
        for n in range(N):
            r0 = (a * N + n) * hh1
            q1_ref[(a + 1) % 4, n, (a + 1) // 4:(a + 1) // 4 + hh1, :] = (
                y1[r0:r0 + hh1, :])

    # ---------------- layer 2 ----------------
    for a in range(2):
        for dy in range(3):
            s = 2 * a + dy
            for n in range(N):
                r0 = (a * N + n) * hh2
                pt2_ref[r0:r0 + hh2, dy * K2:(dy + 1) * K2] = (
                    q1_ref[s % 4, n, s // 4:s // 4 + hh2, :].astype(jnp.bfloat16))
    acc2 = jnp.dot(pt2_ref[...], B2_ref[...],
                   preferred_element_type=jnp.float32) + b2_ref[...]
    y2 = leaky(acc2)
    out2_ref[...] = y2
    # Scatter y2 into its 2 row-parity groups for layer 3.
    for a in range(2):
        for n in range(N):
            r0 = (a * N + n) * hh2
            q2_ref[(a + 1) % 2, n, (a + 1) // 2:(a + 1) // 2 + hh2, :] = (
                y2[r0:r0 + hh2, :])

    # ---------------- layer 3 ----------------
    for dy in range(3):
        for n in range(N):
            r0 = n * hh3
            pt3_ref[r0:r0 + hh3, dy * K3:(dy + 1) * K3] = (
                q2_ref[dy % 2, n, dy // 2:dy // 2 + hh3, :].astype(jnp.bfloat16))
    acc3 = jnp.dot(pt3_ref[...], B3_ref[...],
                   preferred_element_type=jnp.float32) + b3_ref[...]
    out3_ref[...] = leaky(acc3)


def _conv_as_rowflat_matmul(weight, bias, w_in):
    """Lower a 3x3 / stride-2 / pad-1 conv to a single row-flat matmul.

    weight: (Cout, Cin, 3, 3) torch layout; bias: (Cout,); w_in: input width.
    Returns B of shape (3*w_in*Cin, w_out*Cout) bf16 with
      B[(dy, j_in, cin), (j_out, cout)] = weight[cout, cin, dy, j_in - 2*j_out + 1]
    (zero when the column tap falls outside the kernel; this also encodes the
    horizontal zero-padding), and the bias tiled over the flat output row (f32).
    """
    cout, cin = weight.shape[0], weight.shape[1]
    w_out = w_in // 2
    j_in = jnp.arange(w_in)
    j_out = jnp.arange(w_out)
    dx = jnp.arange(3)
    sel = (j_in[None, :, None] ==
           (2 * j_out[None, None, :] + dx[:, None, None] - 1)).astype(jnp.float32)
    B = jnp.einsum('xjk,oidx->djiko', sel, weight.astype(jnp.float32))
    B = B.reshape(3 * w_in * cin, w_out * cout).astype(jnp.bfloat16)
    brow = jnp.tile(bias.astype(jnp.float32), w_out).reshape(1, w_out * cout)
    return B, brow


def prepare_params(p1, p2, p3, W):
    """Hoisted weight prep (done once, outside the per-call forward path)."""
    B1, b1 = _conv_as_rowflat_matmul(*p1, W)
    B2, b2 = _conv_as_rowflat_matmul(*p2, W // 2)
    B3, b3 = _conv_as_rowflat_matmul(*p3, W // 4)
    return (B1, b1, B2, b2, B3, b3)


def aux_encoder_forward(x_nchw, prep):
    """Forward pass of Aux_encoder. Returns (spa_x1, spa_x2, spa_x3) in NCHW."""
    B1, b1, B2, b2, B3, b3 = prep
    N, Cin, H, W = x_nchw.shape
    if H % 8 != 0 or W % 8 != 0:
        # TODO(synk): generalize with row tiling + halo for arbitrary H, W.
        raise ValueError("fused Aux_encoder kernel needs H, W divisible by 8")

    Ho1, Wo1 = H // 2, W // 2
    Ho2, Wo2 = H // 4, W // 4
    Ho3, Wo3 = H // 8, W // 8
    C1 = B1.shape[1] // Wo1
    C2 = B2.shape[1] // Wo2
    C3 = B3.shape[1] // Wo3

    # Row-flat input (rows = image rows, lanes = W*Cin), row-padded and grouped
    # into 8 row-phase planes so every layer-1 tap is a contiguous row slab.
    U1 = H // 8 + 1
    xt = jnp.transpose(x_nchw, (0, 2, 3, 1)).reshape(N, H, W * Cin)
    xpad = jnp.pad(xt, ((0, 0), (1, 8 * U1 - H - 1), (0, 0)))
    x_ph = jnp.transpose(xpad.reshape(N, U1, 8, W * Cin), (2, 0, 1, 3))

    flops = 2 * N * (Ho1 * 3 * W * Cin * Wo1 * C1
                     + Ho2 * 3 * Wo1 * C1 * Wo2 * C2
                     + Ho3 * 3 * Wo2 * C2 * Wo3 * C3)
    bytes_accessed = (x_ph.size * 4
                      + (B1.size + B2.size + B3.size) * 2
                      + (b1.size + b2.size + b3.size) * 4
                      + 4 * N * (Ho1 * Wo1 * C1 + Ho2 * Wo2 * C2 + Ho3 * Wo3 * C3))

    out1, out2, out3 = pl.pallas_call(
        _fused_aux_encoder_kernel,
        out_shape=(
            jax.ShapeDtypeStruct((N * Ho1, Wo1 * C1), jnp.float32),
            jax.ShapeDtypeStruct((N * Ho2, Wo2 * C2), jnp.float32),
            jax.ShapeDtypeStruct((N * Ho3, Wo3 * C3), jnp.float32),
        ),
        scratch_shapes=[
            pltpu.VMEM((4, N, Ho1 // 4 + 1, Wo1 * C1), jnp.float32),   # y1 phases
            pltpu.VMEM((2, N, Ho2 // 2 + 1, Wo2 * C2), jnp.float32),   # y2 phases
            pltpu.VMEM((N * Ho1, 3 * W * Cin), jnp.bfloat16),          # patch L1
            pltpu.VMEM((N * Ho2, 3 * Wo1 * C1), jnp.bfloat16),         # patch L2
            pltpu.VMEM((N * Ho3, 3 * Wo2 * C2), jnp.bfloat16),         # patch L3
        ],
        cost_estimate=pl.CostEstimate(
            flops=flops, transcendentals=0, bytes_accessed=bytes_accessed),
    )(x_ph, B1, b1, B2, b2, B3, b3)

    # Undo the (row-phase, n, row) ordering and return NCHW like the PyTorch module.
    spa1 = (out1.reshape(4, N, Ho1 // 4, Wo1, C1)
            .transpose(1, 4, 2, 0, 3).reshape(N, C1, Ho1, Wo1))
    spa2 = (out2.reshape(2, N, Ho2 // 2, Wo2, C2)
            .transpose(1, 4, 2, 0, 3).reshape(N, C2, Ho2, Wo2))
    spa3 = out3.reshape(N, Ho3, Wo3, C3).transpose(0, 3, 1, 2)
    return spa1, spa2, spa3


def _init_conv(kw, kb, cin, cout):
    """Deterministic PyTorch-like (kaiming-uniform-ish) init."""
    fan_in = cin * 3 * 3
    bound = float(1.0 / (fan_in ** 0.5))
    w = jax.random.uniform(kw, (cout, cin, 3, 3), jnp.float32, -bound, bound)
    b = jax.random.uniform(kb, (cout,), jnp.float32, -bound, bound)
    return w, b


def _reference_conv(x, w, b):
    """Pure-XLA f32 reference for correctness checking (NCHW)."""
    y = jax.lax.conv_general_dilated(
        x, w, window_strides=(2, 2), padding=((1, 1), (1, 1)),
        dimension_numbers=("NCHW", "OIHW", "NCHW"))
    y = y + b[None, :, None, None]
    return jnp.where(y >= 0, y, LEAK * y)


if __name__ == "__main__":
    key = jax.random.PRNGKey(0)
    in_num, out_num = 4, 8
    N, H, W = 2, 16, 16

    keys = jax.random.split(key, 7)
    x = jax.random.normal(keys[0], (N, in_num, H, W), jnp.float32)

    p1 = _init_conv(keys[1], keys[2], in_num, out_num)
    p2 = _init_conv(keys[3], keys[4], out_num, out_num * 2)
    p3 = _init_conv(keys[5], keys[6], out_num * 2, out_num * 4)

    prep = prepare_params(p1, p2, p3, W)   # hoisted weight prep (done once)
    fwd = jax.jit(functools.partial(aux_encoder_forward, prep=prep))
    spa_x1, spa_x2, spa_x3 = fwd(x)
    jax.block_until_ready((spa_x1, spa_x2, spa_x3))

    # Sanity check against the f32 XLA conv reference. Tolerance is loosened
    # because the kernel feeds the MXU bf16 operands (f32 accumulation); this
    # ~1e-2-level deviation should be flagged to downstream consumers.
    r1 = _reference_conv(x, *p1)
    r2 = _reference_conv(r1, *p2)
    r3 = _reference_conv(r2, *p3)
    assert spa_x1.shape == (N, out_num, 8, 8)
    assert spa_x2.shape == (N, out_num * 2, 4, 4)
    assert spa_x3.shape == (N, out_num * 4, 2, 2)
    assert jnp.allclose(spa_x1, r1, atol=2e-2, rtol=2e-2)
    assert jnp.allclose(spa_x2, r2, atol=2e-2, rtol=2e-2)
    assert jnp.allclose(spa_x3, r3, atol=2e-2, rtol=2e-2)

    print("KERNEL_OK")
</pallas_src>

<mosaic_0001>
module attributes {stable_mosaic.version = 11 : i64} {
  func.func @_fused_aux_encoder_kernel(%arg0: memref<8x2x3x64xf32, #tpu.memory_space<vmem>>, %arg1: memref<192x64xbf16, #tpu.memory_space<vmem>>, %arg2: memref<1x64xf32, #tpu.memory_space<vmem>>, %arg3: memref<192x64xbf16, #tpu.memory_space<vmem>>, %arg4: memref<1x64xf32, #tpu.memory_space<vmem>>, %arg5: memref<192x64xbf16, #tpu.memory_space<vmem>>, %arg6: memref<1x64xf32, #tpu.memory_space<vmem>>, %arg7: memref<16x64xf32, #tpu.memory_space<vmem>>, %arg8: memref<8x64xf32, #tpu.memory_space<vmem>>, %arg9: memref<4x64xf32, #tpu.memory_space<vmem>>, %arg10: memref<4x2x3x64xf32, #tpu.memory_space<vmem>>, %arg11: memref<2x2x3x64xf32, #tpu.memory_space<vmem>>, %arg12: memref<16x192xbf16, #tpu.memory_space<vmem>>, %arg13: memref<8x192xbf16, #tpu.memory_space<vmem>>, %arg14: memref<4x192xbf16, #tpu.memory_space<vmem>>) attributes {dimension_semantics = [], scalar_prefetch = 0 : i64, scratch_operands = 5 : i64, tpu.core_type = #tpu.core_type<tc>} {
    %cst = arith.constant 0.000000e+00 : f32
    %0 = vector.broadcast %cst : f32 to vector<4x2x3x64xf32>
    %c0 = arith.constant 0 : index
    %c0_0 = arith.constant 0 : index
    %c0_1 = arith.constant 0 : index
    %c0_2 = arith.constant 0 : index
    %1 = vector.load %arg10[%c0, %c0_0, %c0_1, %c0_2] : memref<4x2x3x64xf32, #tpu.memory_space<vmem>>, vector<4x2x3x64xf32>
    tpu.vector_store %arg10[%c0, %c0_0, %c0_1, %c0_2], %0 {strides = array<i32>} : memref<4x2x3x64xf32, #tpu.memory_space<vmem>>, vector<4x2x3x64xf32>,
    %cst_3 = arith.constant 0.000000e+00 : f32
    %2 = vector.broadcast %cst_3 : f32 to vector<2x2x3x64xf32>
    %c0_4 = arith.constant 0 : index
    %c0_5 = arith.constant 0 : index
    %c0_6 = arith.constant 0 : index
    %c0_7 = arith.constant 0 : index
    %3 = vector.load %arg11[%c0_4, %c0_5, %c0_6, %c0_7] : memref<2x2x3x64xf32, #tpu.memory_space<vmem>>, vector<2x2x3x64xf32>
    tpu.vector_store %arg11[%c0_4, %c0_5, %c0_6, %c0_7], %2 {strides = array<i32>} : memref<2x2x3x64xf32, #tpu.memory_space<vmem>>, vector<2x2x3x64xf32>,
    %c0_8 = arith.constant 0 : index
    %c0_9 = arith.constant 0 : index
    %c0_10 = arith.constant 0 : index
    %c0_11 = arith.constant 0 : index
    %4 = vector.load %arg0[%c0_8, %c0_9, %c0_10, %c0_11] : memref<8x2x3x64xf32, #tpu.memory_space<vmem>>, vector<1x1x2x64xf32>
    %5 = vector.shape_cast %4 : vector<1x1x2x64xf32> to vector<2x64xf32>
    %6 = arith.truncf %5 : vector<2x64xf32> to vector<2x64xbf16>
    %c0_12 = arith.constant 0 : index
    %c0_13 = arith.constant 0 : index
    %7 = vector.load %arg12[%c0_12, %c0_13] : memref<16x192xbf16, #tpu.memory_space<vmem>>, vector<2x64xbf16>
    tpu.vector_store %arg12[%c0_12, %c0_13], %6 {strides = array<i32>} : memref<16x192xbf16, #tpu.memory_space<vmem>>, vector<2x64xbf16>,
    %c0_14 = arith.constant 0 : index
    %c1 = arith.constant 1 : index
    %c0_15 = arith.constant 0 : index
    %c0_16 = arith.constant 0 : index
    %8 = vector.load %arg0[%c0_14, %c1, %c0_15, %c0_16] : memref<8x2x3x64xf32, #tpu.memory_space<vmem>>, vector<1x1x2x64xf32>
    %9 = vector.shape_cast %8 : vector<1x1x2x64xf32> to vector<2x64xf32>
    %10 = arith.truncf %9 : vector<2x64xf32> to vector<2x64xbf16>
    %c2 = arith.constant 2 : index
    %c0_17 = arith.constant 0 : index
    %11 = vector.load %arg12[%c2, %c0_17] : memref<16x192xbf16, #tpu.memory_space<vmem>>, vector<2x64xbf16>
    tpu.vector_store %arg12[%c2, %c0_17], %10 {strides = array<i32>} : memref<16x192xbf16, #tpu.memory_space<vmem>>, vector<2x64xbf16>,
    %c1_18 = arith.constant 1 : index
    %c0_19 = arith.constant 0 : index
    %c0_20 = arith.constant 0 : index
    %c0_21 = arith.constant 0 : index
    %12 = vector.load %arg0[%c1_18, %c0_19, %c0_20, %c0_21] : memref<8x2x3x64xf32, #tpu.memory_space<vmem>>, vector<1x1x2x64xf32>
    %13 = vector.shape_cast %12 : vector<1x1x2x64xf32> to vector<2x64xf32>
    %14 = arith.truncf %13 : vector<2x64xf32> to vector<2x64xbf16>
    %c0_22 = arith.constant 0 : index
    %c64 = arith.constant 64 : index
    %15 = vector.load %arg12[%c0_22, %c64] : memref<16x192xbf16, #tpu.memory_space<vmem>>, vector<2x64xbf16>
    tpu.vector_store %arg12[%c0_22, %c64], %14 {strides = array<i32>} : memref<16x192xbf16, #tpu.memory_space<vmem>>, vector<2x64xbf16>,
    %c1_23 = arith.constant 1 : index
    %c1_24 = arith.constant 1 : index
    %c0_25 = arith.constant 0 : index
    %c0_26 = arith.constant 0 : index
    %16 = vector.load %arg0[%c1_23, %c1_24, %c0_25, %c0_26] : memref<8x2x3x64xf32, #tpu.memory_space<vmem>>, vector<1x1x2x64xf32>
    %17 = vector.shape_cast %16 : vector<1x1x2x64xf32> to vector<2x64xf32>
    %18 = arith.truncf %17 : vector<2x64xf32> to vector<2x64xbf16>
    %c2_27 = arith.constant 2 : index
    %c64_28 = arith.constant 64 : index
    %19 = vector.load %arg12[%c2_27, %c64_28] : memref<16x192xbf16, #tpu.memory_space<vmem>>, vector<2x64xbf16>
    tpu.vector_store %arg12[%c2_27, %c64_28], %18 {strides = array<i32>} : memref<16x192xbf16, #tpu.memory_space<vmem>>, vector<2x64xbf16>,
    %c2_29 = arith.constant 2 : index
    %c0_30 = arith.constant 0 : index
    %c0_31 = arith.constant 0 : index
    %c0_32 = arith.constant 0 : index
    %20 = vector.load %arg0[%c2_29, %c0_30, %c0_31, %c0_32] : memref<8x2x3x64xf32, #tpu.memory_space<vmem>>, vector<1x1x2x64xf32>
    %21 = vector.shape_cast %20 : vector<1x1x2x64xf32> to vector<2x64xf32>
    %22 = arith.truncf %21 : vector<2x64xf32> to vector<2x64xbf16>
    %c0_33 = arith.constant 0 : index
    %c128 = arith.constant 128 : index
    %23 = vector.load %arg12[%c0_33, %c128] : memref<16x192xbf16, #tpu.memory_space<vmem>>, vector<2x64xbf16>
    tpu.vector_store %arg12[%c0_33, %c128], %22 {strides = array<i32>} : memref<16x192xbf16, #tpu.memory_space<vmem>>, vector<2x64xbf16>,
    %c2_34 = arith.constant 2 : index
    %c1_35 = arith.constant 1 : index
    %c0_36 = arith.constant 0 : index
    %c0_37 = arith.constant 0 : index
    %24 = vector.load %arg0[%c2_34, %c1_35, %c0_36, %c0_37] : memref<8x2x3x64xf32, #tpu.memory_space<vmem>>, vector<1x1x2x64xf32>
    %25 = vector.shape_cast %24 : vector<1x1x2x64xf32> to vector<2x64xf32>
    %26 = arith.truncf %25 : vector<2x64xf32> to vector<2x64xbf16>
    %c2_38 = arith.constant 2 : index
    %c128_39 = arith.constant 128 : index
    %27 = vector.load %arg12[%c2_38, %c128_39] : memref<16x192xbf16, #tpu.memory_space<vmem>>, vector<2x64xbf16>
    tpu.vector_store %arg12[%c2_38, %c128_39], %26 {strides = array<i32>} : memref<16x192xbf16, #tpu.memory_space<vmem>>, vector<2x64xbf16>,
    %c2_40 = arith.constant 2 : index
    %c0_41 = arith.constant 0 : index
    %c0_42 = arith.constant 0 : index
    %c0_43 = arith.constant 0 : index
    %28 = vector.load %arg0[%c2_40, %c0_41, %c0_42, %c0_43] : memref<8x2x3x64xf32, #tpu.memory_space<vmem>>, vector<1x1x2x64xf32>
    %29 = vector.shape_cast %28 : vector<1x1x2x64xf32> to vector<2x64xf32>
    %30 = arith.truncf %29 : vector<2x64xf32> to vector<2x64xbf16>
    %c4 = arith.constant 4 : index
    %c0_44 = arith.constant 0 : index
    %31 = vector.load %arg12[%c4, %c0_44] : memref<16x192xbf16, #tpu.memory_space<vmem>>, vector<2x64xbf16>
    tpu.vector_store %arg12[%c4, %c0_44], %30 {strides = array<i32>} : memref<16x192xbf16, #tpu.memory_space<vmem>>, vector<2x64xbf16>,
    %c2_45 = arith.constant 2 : index
    %c1_46 = arith.constant 1 : index
    %c0_47 = arith.constant 0 : index
    %c0_48 = arith.constant 0 : index
    %32 = vector.load %arg0[%c2_45, %c1_46, %c0_47, %c0_48] : memref<8x2x3x64xf32, #tpu.memory_space<vmem>>, vector<1x1x2x64xf32>
    %33 = vector.shape_cast %32 : vector<1x1x2x64xf32> to vector<2x64xf32>
    %34 = arith.truncf %33 : vector<2x64xf32> to vector<2x64xbf16>
    %c6 = arith.constant 6 : index
    %c0_49 = arith.constant 0 : index
    %35 = vector.load %arg12[%c6, %c0_49] : memref<16x192xbf16, #tpu.memory_space<vmem>>, vector<2x64xbf16>
    tpu.vector_store %arg12[%c6, %c0_49], %34 {strides = array<i32>} : memref<16x192xbf16, #tpu.memory_space<vmem>>, vector<2x64xbf16>,
    %c3 = arith.constant 3 : index
    %c0_50 = arith.constant 0 : index
    %c0_51 = arith.constant 0 : index
    %c0_52 = arith.constant 0 : index
    %36 = vector.load %arg0[%c3, %c0_50, %c0_51, %c0_52] : memref<8x2x3x64xf32, #tpu.memory_space<vmem>>, vector<1x1x2x64xf32>
    %37 = vector.shape_cast %36 : vector<1x1x2x64xf32> to vector<2x64xf32>
    %38 = arith.truncf %37 : vector<2x64xf32> to vector<2x64xbf16>
    %c4_53 = arith.constant 4 : index
    %c64_54 = arith.constant 64 : index
    %39 = vector.load %arg12[%c4_53, %c64_54] : memref<16x192xbf16, #tpu.memory_space<vmem>>, vector<2x64xbf16>
    tpu.vector_store %arg12[%c4_53, %c64_54], %38 {strides = array<i32>} : memref<16x192xbf16, #tpu.memory_space<vmem>>, vector<2x64xbf16>,
    %c3_55 = arith.constant 3 : index
    %c1_56 = arith.constant 1 : index
    %c0_57 = arith.constant 0 : index
    %c0_58 = arith.constant 0 : index
    %40 = vector.load %arg0[%c3_55, %c1_56, %c0_57, %c0_58] : memref<8x2x3x64xf32, #tpu.memory_space<vmem>>, vector<1x1x2x64xf32>
    %41 = vector.shape_cast %40 : vector<1x1x2x64xf32> to vector<2x64xf32>
    %42 = arith.truncf %41 : vector<2x64xf32> to vector<2x64xbf16>
    %c6_59 = arith.constant 6 : index
    %c64_60 = arith.constant 64 : index
    %43 = vector.load %arg12[%c6_59, %c64_60] : memref<16x192xbf16, #tpu.memory_space<vmem>>, vector<2x64xbf16>
    tpu.vector_store %arg12[%c6_59, %c64_60], %42 {strides = array<i32>} : memref<16x192xbf16, #tpu.memory_space<vmem>>, vector<2x64xbf16>,
    %c4_61 = arith.constant 4 : index
    %c0_62 = arith.constant 0 : index
    %c0_63 = arith.constant 0 : index
    %c0_64 = arith.constant 0 : index
    %44 = vector.load %arg0[%c4_61, %c0_62, %c0_63, %c0_64] : memref<8x2x3x64xf32, #tpu.memory_space<vmem>>, vector<1x1x2x64xf32>
    %45 = vector.shape_cast %44 : vector<1x1x2x64xf32> to vector<2x64xf32>
    %46 = arith.truncf %45 : vector<2x64xf32> to vector<2x64xbf16>
    %c4_65 = arith.constant 4 : index
    %c128_66 = arith.constant 128 : index
    %47 = vector.load %arg12[%c4_65, %c128_66] : memref<16x192xbf16, #tpu.memory_space<vmem>>, vector<2x64xbf16>
    tpu.vector_store %arg12[%c4_65, %c128_66], %46 {strides = array<i32>} : memref<16x192xbf16, #tpu.memory_space<vmem>>, vector<2x64xbf16>,
    %c4_67 = arith.constant 4 : index
    %c1_68 = arith.constant 1 : index
    %c0_69 = arith.constant 0 : index
    %c0_70 = arith.constant 0 : index
    %48 = vector.load %arg0[%c4_67, %c1_68, %c0_69, %c0_70] : memref<8x2x3x64xf32, #tpu.memory_space<vmem>>, vector<1x1x2x64xf32>
    %49 = vector.shape_cast %48 : vector<1x1x2x64xf32> to vector<2x64xf32>
    %50 = arith.truncf %49 : vector<2x64xf32> to vector<2x64xbf16>
    %c6_71 = arith.constant 6 : index
    %c128_72 = arith.constant 128 : index
    %51 = vector.load %arg12[%c6_71, %c128_72] : memref<16x192xbf16, #tpu.memory_space<vmem>>, vector<2x64xbf16>
    tpu.vector_store %arg12[%c6_71, %c128_72], %50 {strides = array<i32>} : memref<16x192xbf16, #tpu.memory_space<vmem>>, vector<2x64xbf16>,
    %c4_73 = arith.constant 4 : index
    %c0_74 = arith.constant 0 : index
    %c0_75 = arith.constant 0 : index
    %c0_76 = arith.constant 0 : index
    %52 = vector.load %arg0[%c4_73, %c0_74, %c0_75, %c0_76] : memref<8x2x3x64xf32, #tpu.memory_space<vmem>>, vector<1x1x2x64xf32>
    %53 = vector.shape_cast %52 : vector<1x1x2x64xf32> to vector<2x64xf32>
    %54 = arith.truncf %53 : vector<2x64xf32> to vector<2x64xbf16>
    %c8 = arith.constant 8 : index
    %c0_77 = arith.constant 0 : index
    %55 = vector.load %arg12[%c8, %c0_77] : memref<16x192xbf16, #tpu.memory_space<vmem>>, vector<2x64xbf16>
    tpu.vector_store %arg12[%c8, %c0_77], %54 {strides = array<i32>} : memref<16x192xbf16, #tpu.memory_space<vmem>>, vector<2x64xbf16>,
    %c4_78 = arith.constant 4 : index
    %c1_79 = arith.constant 1 : index
    %c0_80 = arith.constant 0 : index
    %c0_81 = arith.constant 0 : index
    %56 = vector.load %arg0[%c4_78, %c1_79, %c0_80, %c0_81] : memref<8x2x3x64xf32, #tpu.memory_space<vmem>>, vector<1x1x2x64xf32>
    %57 = vector.shape_cast %56 : vector<1x1x2x64xf32> to vector<2x64xf32>
    %58 = arith.truncf %57 : vector<2x64xf32> to vector<2x64xbf16>
    %c10 = arith.constant 10 : index
    %c0_82 = arith.constant 0 : index
    %59 = vector.load %arg12[%c10, %c0_82] : memref<16x192xbf16, #tpu.memory_space<vmem>>, vector<2x64xbf16>
    tpu.vector_store %arg12[%c10, %c0_82], %58 {strides = array<i32>} : memref<16x192xbf16, #tpu.memory_space<vmem>>, vector<2x64xbf16>,
    %c5 = arith.constant 5 : index
    %c0_83 = arith.constant 0 : index
    %c0_84 = arith.constant 0 : index
    %c0_85 = arith.constant 0 : index
    %60 = vector.load %arg0[%c5, %c0_83, %c0_84, %c0_85] : memref<8x2x3x64xf32, #tpu.memory_space<vmem>>, vector<1x1x2x64xf32>
    %61 = vector.shape_cast %60 : vector<1x1x2x64xf32> to vector<2x64xf32>
    %62 = arith.truncf %61 : vector<2x64xf32> to vector<2x64xbf16>
    %c8_86 = arith.constant 8 : index
    %c64_87 = arith.constant 64 : index
    %63 = vector.load %arg12[%c8_86, %c64_87] : memref<16x192xbf16, #tpu.memory_space<vmem>>, vector<2x64xbf16>
    tpu.vector_store %arg12[%c8_86, %c64_87], %62 {strides = array<i32>} : memref<16x192xbf16, #tpu.memory_space<vmem>>, vector<2x64xbf16>,
    %c5_88 = arith.constant 5 : index
    %c1_89 = arith.constant 1 : index
    %c0_90 = arith.constant 0 : index
    %c0_91 = arith.constant 0 : index
    %64 = vector.load %arg0[%c5_88, %c1_89, %c0_90, %c0_91] : memref<8x2x3x64xf32, #tpu.memory_space<vmem>>, vector<1x1x2x64xf32>
    %65 = vector.shape_cast %64 : vector<1x1x2x64xf32> to vector<2x64xf32>
    %66 = arith.truncf %65 : vector<2x64xf32> to vector<2x64xbf16>
    %c10_92 = arith.constant 10 : index
    %c64_93 = arith.constant 64 : index
    %67 = vector.load %arg12[%c10_92, %c64_93] : memref<16x192xbf16, #tpu.memory_space<vmem>>, vector<2x64xbf16>
    tpu.vector_store %arg12[%c10_92, %c64_93], %66 {strides = array<i32>} : memref<16x192xbf16, #tpu.memory_space<vmem>>, vector<2x64xbf16>,
    %c6_94 = arith.constant 6 : index
    %c0_95 = arith.constant 0 : index
    %c0_96 = arith.constant 0 : index
    %c0_97 = arith.constant 0 : index
    %68 = vector.load %arg0[%c6_94, %c0_95, %c0_96, %c0_97] : memref<8x2x3x64xf32, #tpu.memory_space<vmem>>, vector<1x1x2x64xf32>
    %69 = vector.shape_cast %68 : vector<1x1x2x64xf32> to vector<2x64xf32>
    %70 = arith.truncf %69 : vector<2x64xf32> to vector<2x64xbf16>
    %c8_98 = arith.constant 8 : index
    %c128_99 = arith.constant 128 : index
    %71 = vector.load %arg12[%c8_98, %c128_99] : memref<16x192xbf16, #tpu.memory_space<vmem>>, vector<2x64xbf16>
    tpu.vector_store %arg12[%c8_98, %c128_99], %70 {strides = array<i32>} : memref<16x192xbf16, #tpu.memory_space<vmem>>, vector<2x64xbf16>,
    %c6_100 = arith.constant 6 : index
    %c1_101 = arith.constant 1 : index
    %c0_102 = arith.constant 0 : index
    %c0_103 = arith.constant 0 : index
    %72 = vector.load %arg0[%c6_100, %c1_101, %c0_102, %c0_103] : memref<8x2x3x64xf32, #tpu.memory_space<vmem>>, vector<1x1x2x64xf32>
    %73 = vector.shape_cast %72 : vector<1x1x2x64xf32> to vector<2x64xf32>
    %74 = arith.truncf %73 : vector<2x64xf32> to vector<2x64xbf16>
    %c10_104 = arith.constant 10 : index
    %c128_105 = arith.constant 128 : index
    %75 = vector.load %arg12[%c10_104, %c128_105] : memref<16x192xbf16, #tpu.memory_space<vmem>>, vector<2x64xbf16>
    tpu.vector_store %arg12[%c10_104, %c128_105], %74 {strides = array<i32>} : memref<16x192xbf16, #tpu.memory_space<vmem>>, vector<2x64xbf16>,
    %c6_106 = arith.constant 6 : index
    %c0_107 = arith.constant 0 : index
    %c0_108 = arith.constant 0 : index
    %c0_109 = arith.constant 0 : index
    %76 = vector.load %arg0[%c6_106, %c0_107, %c0_108, %c0_109] : memref<8x2x3x64xf32, #tpu.memory_space<vmem>>, vector<1x1x2x64xf32>
    %77 = vector.shape_cast %76 : vector<1x1x2x64xf32> to vector<2x64xf32>
    %78 = arith.truncf %77 : vector<2x64xf32> to vector<2x64xbf16>
    %c12 = arith.constant 12 : index
    %c0_110 = arith.constant 0 : index
    %79 = vector.load %arg12[%c12, %c0_110] : memref<16x192xbf16, #tpu.memory_space<vmem>>, vector<2x64xbf16>
    tpu.vector_store %arg12[%c12, %c0_110], %78 {strides = array<i32>} : memref<16x192xbf16, #tpu.memory_space<vmem>>, vector<2x64xbf16>,
    %c6_111 = arith.constant 6 : index
    %c1_112 = arith.constant 1 : index
    %c0_113 = arith.constant 0 : index
    %c0_114 = arith.constant 0 : index
    %80 = vector.load %arg0[%c6_111, %c1_112, %c0_113, %c0_114] : memref<8x2x3x64xf32, #tpu.memory_space<vmem>>, vector<1x1x2x64xf32>
    %81 = vector.shape_cast %80 : vector<1x1x2x64xf32> to vector<2x64xf32>
    %82 = arith.truncf %81 : vector<2x64xf32> to vector<2x64xbf16>
    %c14 = arith.constant 14 : index
    %c0_115 = arith.constant 0 : index
    %83 = vector.load %arg12[%c14, %c0_115] : memref<16x192xbf16, #tpu.memory_space<vmem>>, vector<2x64xbf16>
    tpu.vector_store %arg12[%c14, %c0_115], %82 {strides = array<i32>} : memref<16x192xbf16, #tpu.memory_space<vmem>>, vector<2x64xbf16>,
    %c7 = arith.constant 7 : index
    %c0_116 = arith.constant 0 : index
    %c0_117 = arith.constant 0 : index
    %c0_118 = arith.constant 0 : index
    %84 = vector.load %arg0[%c7, %c0_116, %c0_117, %c0_118] : memref<8x2x3x64xf32, #tpu.memory_space<vmem>>, vector<1x1x2x64xf32>
    %85 = vector.shape_cast %84 : vector<1x1x2x64xf32> to vector<2x64xf32>
    %86 = arith.truncf %85 : vector<2x64xf32> to vector<2x64xbf16>
    %c12_119 = arith.constant 12 : index
    %c64_120 = arith.constant 64 : index
    %87 = vector.load %arg12[%c12_119, %c64_120] : memref<16x192xbf16, #tpu.memory_space<vmem>>, vector<2x64xbf16>
    tpu.vector_store %arg12[%c12_119, %c64_120], %86 {strides = array<i32>} : memref<16x192xbf16, #tpu.memory_space<vmem>>, vector<2x64xbf16>,
    %c7_121 = arith.constant 7 : index
    %c1_122 = arith.constant 1 : index
    %c0_123 = arith.constant 0 : index
    %c0_124 = arith.constant 0 : index
    %88 = vector.load %arg0[%c7_121, %c1_122, %c0_123, %c0_124] : memref<8x2x3x64xf32, #tpu.memory_space<vmem>>, vector<1x1x2x64xf32>
    %89 = vector.shape_cast %88 : vector<1x1x2x64xf32> to vector<2x64xf32>
    %90 = arith.truncf %89 : vector<2x64xf32> to vector<2x64xbf16>
    %c14_125 = arith.constant 14 : index
    %c64_126 = arith.constant 64 : index
    %91 = vector.load %arg12[%c14_125, %c64_126] : memref<16x192xbf16, #tpu.memory_space<vmem>>, vector<2x64xbf16>
    tpu.vector_store %arg12[%c14_125, %c64_126], %90 {strides = array<i32>} : memref<16x192xbf16, #tpu.memory_space<vmem>>, vector<2x64xbf16>,
    %c0_127 = arith.constant 0 : index
    %c0_128 = arith.constant 0 : index
    %c1_129 = arith.constant 1 : index
    %c0_130 = arith.constant 0 : index
    %92 = vector.load %arg0[%c0_127, %c0_128, %c1_129, %c0_130] : memref<8x2x3x64xf32, #tpu.memory_space<vmem>>, vector<1x1x2x64xf32>
    %93 = vector.shape_cast %92 : vector<1x1x2x64xf32> to vector<2x64xf32>
    %94 = arith.truncf %93 : vector<2x64xf32> to vector<2x64xbf16>
    %c12_131 = arith.constant 12 : index
    %c128_132 = arith.constant 128 : index
    %95 = vector.load %arg12[%c12_131, %c128_132] : memref<16x192xbf16, #tpu.memory_space<vmem>>, vector<2x64xbf16>
    tpu.vector_store %arg12[%c12_131, %c128_132], %94 {strides = array<i32>} : memref<16x192xbf16, #tpu.memory_space<vmem>>, vector<2x64xbf16>,
    %c0_133 = arith.constant 0 : index
    %c1_134 = arith.constant 1 : index
    %c1_135 = arith.constant 1 : index
    %c0_136 = arith.constant 0 : index
    %96 = vector.load %arg0[%c0_133, %c1_134, %c1_135, %c0_136] : memref<8x2x3x64xf32, #tpu.memory_space<vmem>>, vector<1x1x2x64xf32>
    %97 = vector.shape_cast %96 : vector<1x1x2x64xf32> to vector<2x64xf32>
    %98 = arith.truncf %97 : vector<2x64xf32> to vector<2x64xbf16>
    %c14_137 = arith.constant 14 : index
    %c128_138 = arith.constant 128 : index
    %99 = vector.load %arg12[%c14_137, %c128_138] : memref<16x192xbf16, #tpu.memory_space<vmem>>, vector<2x64xbf16>
    tpu.vector_store %arg12[%c14_137, %c128_138], %98 {strides = array<i32>} : memref<16x192xbf16, #tpu.memory_space<vmem>>, vector<2x64xbf16>,
    %c0_139 = arith.constant 0 : index
    %c0_140 = arith.constant 0 : index
    %100 = vector.load %arg12[%c0_139, %c0_140] : memref<16x192xbf16, #tpu.memory_space<vmem>>, vector<16x192xbf16>
    %c0_141 = arith.constant 0 : index
    %c0_142 = arith.constant 0 : index
    %101 = vector.load %arg1[%c0_141, %c0_142] : memref<192x64xbf16, #tpu.memory_space<vmem>>, vector<192x64xbf16>
    %cst_143 = arith.constant dense<0.000000e+00> : vector<16x64xf32>
    %102 = tpu.matmul %100, %101, %cst_143 {dimension_numbers = #tpu.dot_dimension_numbers<[1], [0], [0], [1], [0, 0, 1, 1], [], []>} : vector<16x192xbf16>, vector<192x64xbf16>, vector<16x64xf32> -> vector<16x64xf32>
    %c0_144 = arith.constant 0 : index
    %c0_145 = arith.constant 0 : index
    %103 = vector.load %arg2[%c0_144, %c0_145] : memref<1x64xf32, #tpu.memory_space<vmem>>, vector<1x64xf32>
    %104 = vector.broadcast %103 : vector<1x64xf32> to vector<16x64xf32>
    %105 = arith.addf %102, %104 : vector<16x64xf32>
    %cst_146 = arith.constant 0.000000e+00 : f32
    %106 = vector.broadcast %cst_146 : f32 to vector<16x64xf32>
    %107 = arith.cmpf oge, %105, %106 : vector<16x64xf32>
    %cst_147 = arith.constant 1.000000e-01 : f32
    %108 = vector.broadcast %cst_147 : f32 to vector<16x64xf32>
    %109 = arith.mulf %108, %105 : vector<16x64xf32>
    %110 = arith.select %107, %105, %109 : vector<16x64xi1>, vector<16x64xf32>
    %c0_148 = arith.constant 0 : index
    %c0_149 = arith.constant 0 : index
    %111 = vector.load %arg7[%c0_148, %c0_149] : memref<16x64xf32, #tpu.memory_space<vmem>>, vector<16x64xf32>
    tpu.vector_store %arg7[%c0_148, %c0_149], %110 {strides = array<i32>} : memref<16x64xf32, #tpu.memory_space<vmem>>, vector<16x64xf32>,
    %112 = vector.extract_strided_slice %110 {offsets = [0, 0], sizes = [2, 64], strides = [1, 1]} : vector<16x64xf32> to vector<2x64xf32>
    %c1_150 = arith.constant 1 : index
    %c0_151 = arith.constant 0 : index
    %c0_152 = arith.constant 0 : index
    %c0_153 = arith.constant 0 : index
    %113 = vector.load %arg10[%c1_150, %c0_151, %c0_152, %c0_153] : memref<4x2x3x64xf32, #tpu.memory_space<vmem>>, vector<1x1x2x64xf32>
    %114 = vector.shape_cast %113 : vector<1x1x2x64xf32> to vector<2x64xf32>
    %115 = vector.shape_cast %112 : vector<2x64xf32> to vector<1x1x2x64xf32>
    tpu.vector_store %arg10[%c1_150, %c0_151, %c0_152, %c0_153], %115 {strides = array<i32>} : memref<4x2x3x64xf32, #tpu.memory_space<vmem>>, vector<1x1x2x64xf32>,
    %116 = vector.extract_strided_slice %110 {offsets = [2, 0], sizes = [2, 64], strides = [1, 1]} : vector<16x64xf32> to vector<2x64xf32>
    %c1_154 = arith.constant 1 : index
    %c1_155 = arith.constant 1 : index
    %c0_156 = arith.constant 0 : index
    %c0_157 = arith.constant 0 : index
    %117 = vector.load %arg10[%c1_154, %c1_155, %c0_156, %c0_157] : memref<4x2x3x64xf32, #tpu.memory_space<vmem>>, vector<1x1x2x64xf32>
    %118 = vector.shape_cast %117 : vector<1x1x2x64xf32> to vector<2x64xf32>
    %119 = vector.shape_cast %116 : vector<2x64xf32> to vector<1x1x2x64xf32>
    tpu.vector_store %arg10[%c1_154, %c1_155, %c0_156, %c0_157], %119 {strides = array<i32>} : memref<4x2x3x64xf32, #tpu.memory_space<vmem>>, vector<1x1x2x64xf32>,
    %120 = vector.extract_strided_slice %110 {offsets = [4, 0], sizes = [2, 64], strides = [1, 1]} : vector<16x64xf32> to vector<2x64xf32>
    %c2_158 = arith.constant 2 : index
    %c0_159 = arith.constant 0 : index
    %c0_160 = arith.constant 0 : index
    %c0_161 = arith.constant 0 : index
    %121 = vector.load %arg10[%c2_158, %c0_159, %c0_160, %c0_161] : memref<4x2x3x64xf32, #tpu.memory_space<vmem>>, vector<1x1x2x64xf32>
    %122 = vector.shape_cast %121 : vector<1x1x2x64xf32> to vector<2x64xf32>
    %123 = vector.shape_cast %120 : vector<2x64xf32> to vector<1x1x2x64xf32>
    tpu.vector_store %arg10[%c2_158, %c0_159, %c0_160, %c0_161], %123 {strides = array<i32>} : memref<4x2x3x64xf32, #tpu.memory_space<vmem>>, vector<1x1x2x64xf32>,
    %124 = vector.extract_strided_slice %110 {offsets = [6, 0], sizes = [2, 64], strides = [1, 1]} : vector<16x64xf32> to vector<2x64xf32>
    %c2_162 = arith.constant 2 : index
    %c1_163 = arith.constant 1 : index
    %c0_164 = arith.constant 0 : index
    %c0_165 = arith.constant 0 : index
    %125 = vector.load %arg10[%c2_162, %c1_163, %c0_164, %c0_165] : memref<4x2x3x64xf32, #tpu.memory_space<vmem>>, vector<1x1x2x64xf32>
    %126 = vector.shape_cast %125 : vector<1x1x2x64xf32> to vector<2x64xf32>
    %127 = vector.shape_cast %124 : vector<2x64xf32> to vector<1x1x2x64xf32>
    tpu.vector_store %arg10[%c2_162, %c1_163, %c0_164, %c0_165], %127 {strides = array<i32>} : memref<4x2x3x64xf32, #tpu.memory_space<vmem>>, vector<1x1x2x64xf32>,
    %128 = vector.extract_strided_slice %110 {offsets = [8, 0], sizes = [2, 64], strides = [1, 1]} : vector<16x64xf32> to vector<2x64xf32>
    %c3_166 = arith.constant 3 : index
    %c0_167 = arith.constant 0 : index
    %c0_168 = arith.constant 0 : index
    %c0_169 = arith.constant 0 : index
    %129 = vector.load %arg10[%c3_166, %c0_167, %c0_168, %c0_169] : memref<4x2x3x64xf32, #tpu.memory_space<vmem>>, vector<1x1x2x64xf32>
    %130 = vector.shape_cast %129 : vector<1x1x2x64xf32> to vector<2x64xf32>
    %131 = vector.shape_cast %128 : vector<2x64xf32> to vector<1x1x2x64xf32>
    tpu.vector_store %arg10[%c3_166, %c0_167, %c0_168, %c0_169], %131 {strides = array<i32>} : memref<4x2x3x64xf32, #tpu.memory_space<vmem>>, vector<1x1x2x64xf32>,
    %132 = vector.extract_strided_slice %110 {offsets = [10, 0], sizes = [2, 64], strides = [1, 1]} : vector<16x64xf32> to vector<2x64xf32>
    %c3_170 = arith.constant 3 : index
    %c1_171 = arith.constant 1 : index
    %c0_172 = arith.constant 0 : index
    %c0_173 = arith.constant 0 : index
    %133 = vector.load %arg10[%c3_170, %c1_171, %c0_172, %c0_173] : memref<4x2x3x64xf32, #tpu.memory_space<vmem>>, vector<1x1x2x64xf32>
    %134 = vector.shape_cast %133 : vector<1x1x2x64xf32> to vector<2x64xf32>
    %135 = vector.shape_cast %132 : vector<2x64xf32> to vector<1x1x2x64xf32>
    tpu.vector_store %arg10[%c3_170, %c1_171, %c0_172, %c0_173], %135 {strides = array<i32>} : memref<4x2x3x64xf32, #tpu.memory_space<vmem>>, vector<1x1x2x64xf32>,
    %136 = vector.extract_strided_slice %110 {offsets = [12, 0], sizes = [2, 64], strides = [1, 1]} : vector<16x64xf32> to vector<2x64xf32>
    %c0_174 = arith.constant 0 : index
    %c0_175 = arith.constant 0 : index
    %c1_176 = arith.constant 1 : index
    %c0_177 = arith.constant 0 : index
    %137 = vector.load %arg10[%c0_174, %c0_175, %c1_176, %c0_177] : memref<4x2x3x64xf32, #tpu.memory_space<vmem>>, vector<1x1x2x64xf32>
    %138 = vector.shape_cast %137 : vector<1x1x2x64xf32> to vector<2x64xf32>
    %139 = vector.shape_cast %136 : vector<2x64xf32> to vector<1x1x2x64xf32>
    tpu.vector_store %arg10[%c0_174, %c0_175, %c1_176, %c0_177], %139 {strides = array<i32>} : memref<4x2x3x64xf32, #tpu.memory_space<vmem>>, vector<1x1x2x64xf32>,
    %140 = vector.extract_strided_slice %110 {offsets = [14, 0], sizes = [2, 64], strides = [1, 1]} : vector<16x64xf32> to vector<2x64xf32>
    %c0_178 = arith.constant 0 : index
    %c1_179 = arith.constant 1 : index
    %c1_180 = arith.constant 1 : index
    %c0_181 = arith.constant 0 : index
    %141 = vector.load %arg10[%c0_178, %c1_179, %c1_180, %c0_181] : memref<4x2x3x64xf32, #tpu.memory_space<vmem>>, vector<1x1x2x64xf32>
    %142 = vector.shape_cast %141 : vector<1x1x2x64xf32> to vector<2x64xf32>
    %143 = vector.shape_cast %140 : vector<2x64xf32> to vector<1x1x2x64xf32>
    tpu.vector_store %arg10[%c0_178, %c1_179, %c1_180, %c0_181], %143 {strides = array<i32>} : memref<4x2x3x64xf32, #tpu.memory_space<vmem>>, vector<1x1x2x64xf32>,
    %c0_182 = arith.constant 0 : index
    %c0_183 = arith.constant 0 : index
    %c0_184 = arith.constant 0 : index
    %c0_185 = arith.constant 0 : index
    %144 = vector.load %arg10[%c0_182, %c0_183, %c0_184, %c0_185] : memref<4x2x3x64xf32, #tpu.memory_space<vmem>>, vector<1x1x2x64xf32>
    %145 = vector.shape_cast %144 : vector<1x1x2x64xf32> to vector<2x64xf32>
    %146 = arith.truncf %145 : vector<2x64xf32> to vector<2x64xbf16>
    %c0_186 = arith.constant 0 : index
    %c0_187 = arith.constant 0 : index
    %147 = vector.load %arg13[%c0_186, %c0_187] : memref<8x192xbf16, #tpu.memory_space<vmem>>, vector<2x64xbf16>
    tpu.vector_store %arg13[%c0_186, %c0_187], %146 {strides = array<i32>} : memref<8x192xbf16, #tpu.memory_space<vmem>>, vector<2x64xbf16>,
    %c0_188 = arith.constant 0 : index
    %c1_189 = arith.constant 1 : index
    %c0_190 = arith.constant 0 : index
    %c0_191 = arith.constant 0 : index
    %148 = vector.load %arg10[%c0_188, %c1_189, %c0_190, %c0_191] : memref<4x2x3x64xf32, #tpu.memory_space<vmem>>, vector<1x1x2x64xf32>
    %149 = vector.shape_cast %148 : vector<1x1x2x64xf32> to vector<2x64xf32>
    %150 = arith.truncf %149 : vector<2x64xf32> to vector<2x64xbf16>
    %c2_192 = arith.constant 2 : index
    %c0_193 = arith.constant 0 : index
    %151 = vector.load %arg13[%c2_192, %c0_193] : memref<8x192xbf16, #tpu.memory_space<vmem>>, vector<2x64xbf16>
    tpu.vector_store %arg13[%c2_192, %c0_193], %150 {strides = array<i32>} : memref<8x192xbf16, #tpu.memory_space<vmem>>, vector<2x64xbf16>,
    %c1_194 = arith.constant 1 : index
    %c0_195 = arith.constant 0 : index
    %c0_196 = arith.constant 0 : index
    %c0_197 = arith.constant 0 : index
    %152 = vector.load %arg10[%c1_194, %c0_195, %c0_196, %c0_197] : memref<4x2x3x64xf32, #tpu.memory_space<vmem>>, vector<1x1x2x64xf32>
    %153 = vector.shape_cast %152 : vector<1x1x2x64xf32> to vector<2x64xf32>
    %154 = arith.truncf %153 : vector<2x64xf32> to vector<2x64xbf16>
    %c0_198 = arith.constant 0 : index
    %c64_199 = arith.constant 64 : index
    %155 = vector.load %arg13[%c0_198, %c64_199] : memref<8x192xbf16, #tpu.memory_space<vmem>>, vector<2x64xbf16>
    tpu.vector_store %arg13[%c0_198, %c64_199], %154 {strides = array<i32>} : memref<8x192xbf16, #tpu.memory_space<vmem>>, vector<2x64xbf16>,
    %c1_200 = arith.constant 1 : index
    %c1_201 = arith.constant 1 : index
    %c0_202 = arith.constant 0 : index
    %c0_203 = arith.constant 0 : index
    %156 = vector.load %arg10[%c1_200, %c1_201, %c0_202, %c0_203] : memref<4x2x3x64xf32, #tpu.memory_space<vmem>>, vector<1x1x2x64xf32>
    %157 = vector.shape_cast %156 : vector<1x1x2x64xf32> to vector<2x64xf32>
    %158 = arith.truncf %157 : vector<2x64xf32> to vector<2x64xbf16>
    %c2_204 = arith.constant 2 : index
    %c64_205 = arith.constant 64 : index
    %159 = vector.load %arg13[%c2_204, %c64_205] : memref<8x192xbf16, #tpu.memory_space<vmem>>, vector<2x64xbf16>
    tpu.vector_store %arg13[%c2_204, %c64_205], %158 {strides = array<i32>} : memref<8x192xbf16, #tpu.memory_space<vmem>>, vector<2x64xbf16>,
    %c2_206 = arith.constant 2 : index
    %c0_207 = arith.constant 0 : index
    %c0_208 = arith.constant 0 : index
    %c0_209 = arith.constant 0 : index
    %160 = vector.load %arg10[%c2_206, %c0_207, %c0_208, %c0_209] : memref<4x2x3x64xf32, #tpu.memory_space<vmem>>, vector<1x1x2x64xf32>
    %161 = vector.shape_cast %160 : vector<1x1x2x64xf32> to vector<2x64xf32>
    %162 = arith.truncf %161 : vector<2x64xf32> to vector<2x64xbf16>
    %c0_210 = arith.constant 0 : index
    %c128_211 = arith.constant 128 : index
    %163 = vector.load %arg13[%c0_210, %c128_211] : memref<8x192xbf16, #tpu.memory_space<vmem>>, vector<2x64xbf16>
    tpu.vector_store %arg13[%c0_210, %c128_211], %162 {strides = array<i32>} : memref<8x192xbf16, #tpu.memory_space<vmem>>, vector<2x64xbf16>,
    %c2_212 = arith.constant 2 : index
    %c1_213 = arith.constant 1 : index
    %c0_214 = arith.constant 0 : index
    %c0_215 = arith.constant 0 : index
    %164 = vector.load %arg10[%c2_212, %c1_213, %c0_214, %c0_215] : memref<4x2x3x64xf32, #tpu.memory_space<vmem>>, vector<1x1x2x64xf32>
    %165 = vector.shape_cast %164 : vector<1x1x2x64xf32> to vector<2x64xf32>
    %166 = arith.truncf %165 : vector<2x64xf32> to vector<2x64xbf16>
    %c2_216 = arith.constant 2 : index
    %c128_217 = arith.constant 128 : index
    %167 = vector.load %arg13[%c2_216, %c128_217] : memref<8x192xbf16, #tpu.memory_space<vmem>>, vector<2x64xbf16>
    tpu.vector_store %arg13[%c2_216, %c128_217], %166 {strides = array<i32>} : memref<8x192xbf16, #tpu.memory_space<vmem>>, vector<2x64xbf16>,
    %c2_218 = arith.constant 2 : index
    %c0_219 = arith.constant 0 : index
    %c0_220 = arith.constant 0 : index
    %c0_221 = arith.constant 0 : index
    %168 = vector.load %arg10[%c2_218, %c0_219, %c0_220, %c0_221] : memref<4x2x3x64xf32, #tpu.memory_space<vmem>>, vector<1x1x2x64xf32>
    %169 = vector.shape_cast %168 : vector<1x1x2x64xf32> to vector<2x64xf32>
    %170 = arith.truncf %169 : vector<2x64xf32> to vector<2x64xbf16>
    %c4_222 = arith.constant 4 : index
    %c0_223 = arith.constant 0 : index
    %171 = vector.load %arg13[%c4_222, %c0_223] : memref<8x192xbf16, #tpu.memory_space<vmem>>, vector<2x64xbf16>
    tpu.vector_store %arg13[%c4_222, %c0_223], %170 {strides = array<i32>} : memref<8x192xbf16, #tpu.memory_space<vmem>>, vector<2x64xbf16>,
    %c2_224 = arith.constant 2 : index
    %c1_225 = arith.constant 1 : index
    %c0_226 = arith.constant 0 : index
    %c0_227 = arith.constant 0 : index
    %172 = vector.load %arg10[%c2_224, %c1_225, %c0_226, %c0_227] : memref<4x2x3x64xf32, #tpu.memory_space<vmem>>, vector<1x1x2x64xf32>
    %173 = vector.shape_cast %172 : vector<1x1x2x64xf32> to vector<2x64xf32>
    %174 = arith.truncf %173 : vector<2x64xf32> to vector<2x64xbf16>
    %c6_228 = arith.constant 6 : index
    %c0_229 = arith.constant 0 : index
    %175 = vector.load %arg13[%c6_228, %c0_229] : memref<8x192xbf16, #tpu.memory_space<vmem>>, vector<2x64xbf16>
    tpu.vector_store %arg13[%c6_228, %c0_229], %174 {strides = array<i32>} : memref<8x192xbf16, #tpu.memory_space<vmem>>, vector<2x64xbf16>,
    %c3_230 = arith.constant 3 : index
    %c0_231 = arith.constant 0 : index
    %c0_232 = arith.constant 0 : index
    %c0_233 = arith.constant 0 : index
    %176 = vector.load %arg10[%c3_230, %c0_231, %c0_232, %c0_233] : memref<4x2x3x64xf32, #tpu.memory_space<vmem>>, vector<1x1x2x64xf32>
    %177 = vector.shape_cast %176 : vector<1x1x2x64xf32> to vector<2x64xf32>
    %178 = arith.truncf %177 : vector<2x64xf32> to vector<2x64xbf16>
    %c4_234 = arith.constant 4 : index
    %c64_235 = arith.constant 64 : index
    %179 = vector.load %arg13[%c4_234, %c64_235] : memref<8x192xbf16, #tpu.memory_space<vmem>>, vector<2x64xbf16>
    tpu.vector_store %arg13[%c4_234, %c64_235], %178 {strides = array<i32>} : memref<8x192xbf16, #tpu.memory_space<vmem>>, vector<2x64xbf16>,
    %c3_236 = arith.constant 3 : index
    %c1_237 = arith.constant 1 : index
    %c0_238 = arith.constant 0 : index
    %c0_239 = arith.constant 0 : index
    %180 = vector.load %arg10[%c3_236, %c1_237, %c0_238, %c0_239] : memref<4x2x3x64xf32, #tpu.memory_space<vmem>>, vector<1x1x2x64xf32>
    %181 = vector.shape_cast %180 : vector<1x1x2x64xf32> to vector<2x64xf32>
    %182 = arith.truncf %181 : vector<2x64xf32> to vector<2x64xbf16>
    %c6_240 = arith.constant 6 : index
    %c64_241 = arith.constant 64 : index
    %183 = vector.load %arg13[%c6_240, %c64_241] : memref<8x192xbf16, #tpu.memory_space<vmem>>, vector<2x64xbf16>
    tpu.vector_store %arg13[%c6_240, %c64_241], %182 {strides = array<i32>} : memref<8x192xbf16, #tpu.memory_space<vmem>>, vector<2x64xbf16>,
    %c0_242 = arith.constant 0 : index
    %c0_243 = arith.constant 0 : index
    %c1_244 = arith.constant 1 : index
    %c0_245 = arith.constant 0 : index
    %184 = vector.load %arg10[%c0_242, %c0_243, %c1_244, %c0_245] : memref<4x2x3x64xf32, #tpu.memory_space<vmem>>, vector<1x1x2x64xf32>
    %185 = vector.shape_cast %184 : vector<1x1x2x64xf32> to vector<2x64xf32>
    %186 = arith.truncf %185 : vector<2x64xf32> to vector<2x64xbf16>
    %c4_246 = arith.constant 4 : index
    %c128_247 = arith.constant 128 : index
    %187 = vector.load %arg13[%c4_246, %c128_247] : memref<8x192xbf16, #tpu.memory_space<vmem>>, vector<2x64xbf16>
    tpu.vector_store %arg13[%c4_246, %c128_247], %186 {strides = array<i32>} : memref<8x192xbf16, #tpu.memory_space<vmem>>, vector<2x64xbf16>,
    %c0_248 = arith.constant 0 : index
    %c1_249 = arith.constant 1 : index
    %c1_250 = arith.constant 1 : index
    %c0_251 = arith.constant 0 : index
    %188 = vector.load %arg10[%c0_248, %c1_249, %c1_250, %c0_251] : memref<4x2x3x64xf32, #tpu.memory_space<vmem>>, vector<1x1x2x64xf32>
    %189 = vector.shape_cast %188 : vector<1x1x2x64xf32> to vector<2x64xf32>
    %190 = arith.truncf %189 : vector<2x64xf32> to vector<2x64xbf16>
    %c6_252 = arith.constant 6 : index
    %c128_253 = arith.constant 128 : index
    %191 = vector.load %arg13[%c6_252, %c128_253] : memref<8x192xbf16, #tpu.memory_space<vmem>>, vector<2x64xbf16>
    tpu.vector_store %arg13[%c6_252, %c128_253], %190 {strides = array<i32>} : memref<8x192xbf16, #tpu.memory_space<vmem>>, vector<2x64xbf16>,
    %c0_254 = arith.constant 0 : index
    %c0_255 = arith.constant 0 : index
    %192 = vector.load %arg13[%c0_254, %c0_255] : memref<8x192xbf16, #tpu.memory_space<vmem>>, vector<8x192xbf16>
    %c0_256 = arith.constant 0 : index
    %c0_257 = arith.constant 0 : index
    %193 = vector.load %arg3[%c0_256, %c0_257] : memref<192x64xbf16, #tpu.memory_space<vmem>>, vector<192x64xbf16>
    %cst_258 = arith.constant dense<0.000000e+00> : vector<8x64xf32>
    %194 = tpu.matmul %192, %193, %cst_258 {dimension_numbers = #tpu.dot_dimension_numbers<[1], [0], [0], [1], [0, 0, 1, 1], [], []>} : vector<8x192xbf16>, vector<192x64xbf16>, vector<8x64xf32> -> vector<8x64xf32>
    %c0_259 = arith.constant 0 : index
    %c0_260 = arith.constant 0 : index
    %195 = vector.load %arg4[%c0_259, %c0_260] : memref<1x64xf32, #tpu.memory_space<vmem>>, vector<1x64xf32>
    %196 = vector.broadcast %195 : vector<1x64xf32> to vector<8x64xf32>
    %197 = arith.addf %194, %196 : vector<8x64xf32>
    %cst_261 = arith.constant 0.000000e+00 : f32
    %198 = vector.broadcast %cst_261 : f32 to vector<8x64xf32>
    %199 = arith.cmpf oge, %197, %198 : vector<8x64xf32>
    %cst_262 = arith.constant 1.000000e-01 : f32
    %200 = vector.broadcast %cst_262 : f32 to vector<8x64xf32>
    %201 = arith.mulf %200, %197 : vector<8x64xf32>
    %202 = arith.select %199, %197, %201 : vector<8x64xi1>, vector<8x64xf32>
    %c0_263 = arith.constant 0 : index
    %c0_264 = arith.constant 0 : index
    %203 = vector.load %arg8[%c0_263, %c0_264] : memref<8x64xf32, #tpu.memory_space<vmem>>, vector<8x64xf32>
    tpu.vector_store %arg8[%c0_263, %c0_264], %202 {strides = array<i32>} : memref<8x64xf32, #tpu.memory_space<vmem>>, vector<8x64xf32>,
    %204 = vector.extract_strided_slice %202 {offsets = [0, 0], sizes = [2, 64], strides = [1, 1]} : vector<8x64xf32> to vector<2x64xf32>
    %c1_265 = arith.constant 1 : index
    %c0_266 = arith.constant 0 : index
    %c0_267 = arith.constant 0 : index
    %c0_268 = arith.constant 0 : index
    %205 = vector.load %arg11[%c1_265, %c0_266, %c0_267, %c0_268] : memref<2x2x3x64xf32, #tpu.memory_space<vmem>>, vector<1x1x2x64xf32>
    %206 = vector.shape_cast %205 : vector<1x1x2x64xf32> to vector<2x64xf32>
    %207 = vector.shape_cast %204 : vector<2x64xf32> to vector<1x1x2x64xf32>
    tpu.vector_store %arg11[%c1_265, %c0_266, %c0_267, %c0_268], %207 {strides = array<i32>} : memref<2x2x3x64xf32, #tpu.memory_space<vmem>>, vector<1x1x2x64xf32>,
    %208 = vector.extract_strided_slice %202 {offsets = [2, 0], sizes = [2, 64], strides = [1, 1]} : vector<8x64xf32> to vector<2x64xf32>
    %c1_269 = arith.constant 1 : index
    %c1_270 = arith.constant 1 : index
    %c0_271 = arith.constant 0 : index
    %c0_272 = arith.constant 0 : index
    %209 = vector.load %arg11[%c1_269, %c1_270, %c0_271, %c0_272] : memref<2x2x3x64xf32, #tpu.memory_space<vmem>>, vector<1x1x2x64xf32>
    %210 = vector.shape_cast %209 : vector<1x1x2x64xf32> to vector<2x64xf32>
    %211 = vector.shape_cast %208 : vector<2x64xf32> to vector<1x1x2x64xf32>
    tpu.vector_store %arg11[%c1_269, %c1_270, %c0_271, %c0_272], %211 {strides = array<i32>} : memref<2x2x3x64xf32, #tpu.memory_space<vmem>>, vector<1x1x2x64xf32>,
    %212 = vector.extract_strided_slice %202 {offsets = [4, 0], sizes = [2, 64], strides = [1, 1]} : vector<8x64xf32> to vector<2x64xf32>
    %c0_273 = arith.constant 0 : index
    %c0_274 = arith.constant 0 : index
    %c1_275 = arith.constant 1 : index
    %c0_276 = arith.constant 0 : index
    %213 = vector.load %arg11[%c0_273, %c0_274, %c1_275, %c0_276] : memref<2x2x3x64xf32, #tpu.memory_space<vmem>>, vector<1x1x2x64xf32>
    %214 = vector.shape_cast %213 : vector<1x1x2x64xf32> to vector<2x64xf32>
    %215 = vector.shape_cast %212 : vector<2x64xf32> to vector<1x1x2x64xf32>
    tpu.vector_store %arg11[%c0_273, %c0_274, %c1_275, %c0_276], %215 {strides = array<i32>} : memref<2x2x3x64xf32, #tpu.memory_space<vmem>>, vector<1x1x2x64xf32>,
    %216 = vector.extract_strided_slice %202 {offsets = [6, 0], sizes = [2, 64], strides = [1, 1]} : vector<8x64xf32> to vector<2x64xf32>
    %c0_277 = arith.constant 0 : index
    %c1_278 = arith.constant 1 : index
    %c1_279 = arith.constant 1 : index
    %c0_280 = arith.constant 0 : index
    %217 = vector.load %arg11[%c0_277, %c1_278, %c1_279, %c0_280] : memref<2x2x3x64xf32, #tpu.memory_space<vmem>>, vector<1x1x2x64xf32>
    %218 = vector.shape_cast %217 : vector<1x1x2x64xf32> to vector<2x64xf32>
    %219 = vector.shape_cast %216 : vector<2x64xf32> to vector<1x1x2x64xf32>
    tpu.vector_store %arg11[%c0_277, %c1_278, %c1_279, %c0_280], %219 {strides = array<i32>} : memref<2x2x3x64xf32, #tpu.memory_space<vmem>>, vector<1x1x2x64xf32>,
    %c0_281 = arith.constant 0 : index
    %c0_282 = arith.constant 0 : index
    %c0_283 = arith.constant 0 : index
    %c0_284 = arith.constant 0 : index
    %220 = vector.load %arg11[%c0_281, %c0_282, %c0_283, %c0_284] : memref<2x2x3x64xf32, #tpu.memory_space<vmem>>, vector<1x1x2x64xf32>
    %221 = vector.shape_cast %220 : vector<1x1x2x64xf32> to vector<2x64xf32>
    %222 = arith.truncf %221 : vector<2x64xf32> to vector<2x64xbf16>
    %c0_285 = arith.constant 0 : index
    %c0_286 = arith.constant 0 : index
    %223 = vector.load %arg14[%c0_285, %c0_286] : memref<4x192xbf16, #tpu.memory_space<vmem>>, vector<2x64xbf16>
    tpu.vector_store %arg14[%c0_285, %c0_286], %222 {strides = array<i32>} : memref<4x192xbf16, #tpu.memory_space<vmem>>, vector<2x64xbf16>,
    %c0_287 = arith.constant 0 : index
    %c1_288 = arith.constant 1 : index
    %c0_289 = arith.constant 0 : index
    %c0_290 = arith.constant 0 : index
    %224 = vector.load %arg11[%c0_287, %c1_288, %c0_289, %c0_290] : memref<2x2x3x64xf32, #tpu.memory_space<vmem>>, vector<1x1x2x64xf32>
    %225 = vector.shape_cast %224 : vector<1x1x2x64xf32> to vector<2x64xf32>
    %226 = arith.truncf %225 : vector<2x64xf32> to vector<2x64xbf16>
    %c2_291 = arith.constant 2 : index
    %c0_292 = arith.constant 0 : index
    %227 = vector.load %arg14[%c2_291, %c0_292] : memref<4x192xbf16, #tpu.memory_space<vmem>>, vector<2x64xbf16>
    tpu.vector_store %arg14[%c2_291, %c0_292], %226 {strides = array<i32>} : memref<4x192xbf16, #tpu.memory_space<vmem>>, vector<2x64xbf16>,
    %c1_293 = arith.constant 1 : index
    %c0_294 = arith.constant 0 : index
    %c0_295 = arith.constant 0 : index
    %c0_296 = arith.constant 0 : index
    %228 = vector.load %arg11[%c1_293, %c0_294, %c0_295, %c0_296] : memref<2x2x3x64xf32, #tpu.memory_space<vmem>>, vector<1x1x2x64xf32>
    %229 = vector.shape_cast %228 : vector<1x1x2x64xf32> to vector<2x64xf32>
    %230 = arith.truncf %229 : vector<2x64xf32> to vector<2x64xbf16>
    %c0_297 = arith.constant 0 : index
    %c64_298 = arith.constant 64 : index
    %231 = vector.load %arg14[%c0_297, %c64_298] : memref<4x192xbf16, #tpu.memory_space<vmem>>, vector<2x64xbf16>
    tpu.vector_store %arg14[%c0_297, %c64_298], %230 {strides = array<i32>} : memref<4x192xbf16, #tpu.memory_space<vmem>>, vector<2x64xbf16>,
    %c1_299 = arith.constant 1 : index
    %c1_300 = arith.constant 1 : index
    %c0_301 = arith.constant 0 : index
    %c0_302 = arith.constant 0 : index
    %232 = vector.load %arg11[%c1_299, %c1_300, %c0_301, %c0_302] : memref<2x2x3x64xf32, #tpu.memory_space<vmem>>, vector<1x1x2x64xf32>
    %233 = vector.shape_cast %232 : vector<1x1x2x64xf32> to vector<2x64xf32>
    %234 = arith.truncf %233 : vector<2x64xf32> to vector<2x64xbf16>
    %c2_303 = arith.constant 2 : index
    %c64_304 = arith.constant 64 : index
    %235 = vector.load %arg14[%c2_303, %c64_304] : memref<4x192xbf16, #tpu.memory_space<vmem>>, vector<2x64xbf16>
    tpu.vector_store %arg14[%c2_303, %c64_304], %234 {strides = array<i32>} : memref<4x192xbf16, #tpu.memory_space<vmem>>, vector<2x64xbf16>,
    %c0_305 = arith.constant 0 : index
    %c0_306 = arith.constant 0 : index
    %c1_307 = arith.constant 1 : index
    %c0_308 = arith.constant 0 : index
    %236 = vector.load %arg11[%c0_305, %c0_306, %c1_307, %c0_308] : memref<2x2x3x64xf32, #tpu.memory_space<vmem>>, vector<1x1x2x64xf32>
    %237 = vector.shape_cast %236 : vector<1x1x2x64xf32> to vector<2x64xf32>
    %238 = arith.truncf %237 : vector<2x64xf32> to vector<2x64xbf16>
    %c0_309 = arith.constant 0 : index
    %c128_310 = arith.constant 128 : index
    %239 = vector.load %arg14[%c0_309, %c128_310] : memref<4x192xbf16, #tpu.memory_space<vmem>>, vector<2x64xbf16>
    tpu.vector_store %arg14[%c0_309, %c128_310], %238 {strides = array<i32>} : memref<4x192xbf16, #tpu.memory_space<vmem>>, vector<2x64xbf16>,
    %c0_311 = arith.constant 0 : index
    %c1_312 = arith.constant 1 : index
    %c1_313 = arith.constant 1 : index
    %c0_314 = arith.constant 0 : index
    %240 = vector.load %arg11[%c0_311, %c1_312, %c1_313, %c0_314] : memref<2x2x3x64xf32, #tpu.memory_space<vmem>>, vector<1x1x2x64xf32>
    %241 = vector.shape_cast %240 : vector<1x1x2x64xf32> to vector<2x64xf32>
    %242 = arith.truncf %241 : vector<2x64xf32> to vector<2x64xbf16>
    %c2_315 = arith.constant 2 : index
    %c128_316 = arith.constant 128 : index
    %243 = vector.load %arg14[%c2_315, %c128_316] : memref<4x192xbf16, #tpu.memory_space<vmem>>, vector<2x64xbf16>
    tpu.vector_store %arg14[%c2_315, %c128_316], %242 {strides = array<i32>} : memref<4x192xbf16, #tpu.memory_space<vmem>>, vector<2x64xbf16>,
    %c0_317 = arith.constant 0 : index
    %c0_318 = arith.constant 0 : index
    %244 = vector.load %arg14[%c0_317, %c0_318] : memref<4x192xbf16, #tpu.memory_space<vmem>>, vector<4x192xbf16>
    %c0_319 = arith.constant 0 : index
    %c0_320 = arith.constant 0 : index
    %245 = vector.load %arg5[%c0_319, %c0_320] : memref<192x64xbf16, #tpu.memory_space<vmem>>, vector<192x64xbf16>
    %cst_321 = arith.constant dense<0.000000e+00> : vector<4x64xf32>
    %246 = tpu.matmul %244, %245, %cst_321 {dimension_numbers = #tpu.dot_dimension_numbers<[1], [0], [0], [1], [0, 0, 1, 1], [], []>} : vector<4x192xbf16>, vector<192x64xbf16>, vector<4x64xf32> -> vector<4x64xf32>
    %c0_322 = arith.constant 0 : index
    %c0_323 = arith.constant 0 : index
    %247 = vector.load %arg6[%c0_322, %c0_323] : memref<1x64xf32, #tpu.memory_space<vmem>>, vector<1x64xf32>
    %248 = vector.broadcast %247 : vector<1x64xf32> to vector<4x64xf32>
    %249 = arith.addf %246, %248 : vector<4x64xf32>
    %cst_324 = arith.constant 0.000000e+00 : f32
    %250 = vector.broadcast %cst_324 : f32 to vector<4x64xf32>
    %251 = arith.cmpf oge, %249, %250 : vector<4x64xf32>
    %cst_325 = arith.constant 1.000000e-01 : f32
    %252 = vector.broadcast %cst_325 : f32 to vector<4x64xf32>
    %253 = arith.mulf %252, %249 : vector<4x64xf32>
    %254 = arith.select %251, %249, %253 : vector<4x64xi1>, vector<4x64xf32>
    %c0_326 = arith.constant 0 : index
    %c0_327 = arith.constant 0 : index
    %255 = vector.load %arg9[%c0_326, %c0_327] : memref<4x64xf32, #tpu.memory_space<vmem>>, vector<4x64xf32>
    tpu.vector_store %arg9[%c0_326, %c0_327], %254 {strides = array<i32>} : memref<4x64xf32, #tpu.memory_space<vmem>>, vector<4x64xf32>,
    return
  }
}

</mosaic_0001>

<bundles_post_ra>
// kernel: aux_encoder_forward.1
= control target key start
LH: loop header
LB: loop body
LE: loop exit
PB: predicated region body
PF: predicated region fallthrough
CT: control target
= control target key end

     0   :  { %s1027_s23 = smov 64   ;;  %vm90_vm0 = vcmask 518146   ;;  %vm45_vm1 = vcmask 516096   ;;  %vm97_vm2 = vcmask 519171   ;;  %vm62_vm3 = vcmask 1040896   ;;  %s1358_s0 = inlined_call_operand.vmem [shape: f32[8,2,3,64], index: 0, kind: input, shape index: {}]   ;;  %s1359_s1 = inlined_call_operand.vmem [shape: bf16[192,64], index: 1, kind: input, shape index: {}]   ;;  %s1360_s2 = inlined_call_operand.vmem [shape: f32[1,64], index: 2, kind: input, shape index: {}]   ;;  %s1361_s7 = inlined_call_operand.vmem [shape: f32[16,64], index: 7, kind: output, shape index: {0}]   ;;  %s1362_s4 = inlined_call_operand.vmem [shape: f32[1,64], index: 4, kind: input, shape index: {}]   ;;  %s1363_s3 = inlined_call_operand.vmem [shape: bf16[192,64], index: 3, kind: input, shape index: {}]   ;;  %s1364_s5 = inlined_call_operand.vmem [shape: bf16[192,64], index: 5, kind: input, shape index: {}]   ;;  %s1365_s8 = inlined_call_operand.vmem [shape: f32[8,64], index: 8, kind: output, shape index: {1}]   ;;  %s1366_s6 = inlined_call_operand.vmem [shape: f32[1,64], index: 6, kind: input, shape index: {}]   ;;  %s1367_s9 = inlined_call_operand.vmem [shape: f32[4,64], index: 9, kind: output, shape index: {2}]  }
   0x1   :  { %v814_v0 = vld [vmem:[%s1358_s0 + $0x18] sm:$0x3]  ;;  %v808_v1 = vld [vmem:[%s1358_s0 + $0x8] sm:$0x3]  ;;  %v815_v4 = vld [vmem:[%s1358_s0 + $0x1c] sm:$0x3] }
   0x2   :  { %v101_v2 = vpack.c.bf16 %v814_v0, %v814_v0  ;;  %v57_v3 = vpack.c.bf16 %v808_v1, %v808_v1  ;;  %v809_v5 = vld [vmem:[%s1358_s0 + $0xc] sm:$0x3]  ;;  %v820_v6 = vld [vmem:[%s1358_s0 + $0x28] sm:$0x3]  ;;  %v993_v8 = vld [vmem:[%s1359_s1 + $0x38] sm:$0xff]  ;;  %v111_v16 = vpack.c.bf16 %v815_v4, %v815_v4  ;;  %vm53_vm4 = vcmask 517121  }
   0x3   :  { %v821_v7 = vld [vmem:[%s1358_s0 + $0x2c] sm:$0x3]  ;;  %v66_v10 = vpack.c.bf16 %v809_v5, %v809_v5  ;;  %v144_v11 = vpack.c.bf16 %v820_v6, %v820_v6  ;;  %v816_v12 = vld [vmem:[%s1358_s0 + $0x20] sm:$0x3]  ;;  %327 = vmatpush.bf16.msra.mxu0 %v993_v8  ;;  %v992_v13 = vld [vmem:[%s1359_s1 + $0x30] sm:$0xff]  ;;  %vm72_vm5 = vcmask 1041921  }
   0x4   :  { %v103_v9 = vrot.slane %v101_v2, 6  ;;  %59 = vrot.lane.b32.xlu0 %v57_v3, %s1027_s23  ;;  %v121_v14 = vpack.c.bf16 %v816_v12, %v816_v12  ;;  %v200_v15 = vld [vmem:[%s1358_s0 + $0x1] sm:$0x3]  ;;  %v152_v17 = vpack.c.bf16 %v821_v7, %v821_v7  ;;  %v826_v22 = vld [vmem:[%s1358_s0 + $0x38] sm:$0x3]  ;;  %v113_v23 = vrot.slane %v111_v16, 5 }
   0x5   :  { %146 = vrot.lane.b32.xlu2 %v144_v11, %s1027_s23  ;;  %v201_v18 = vpack.c.bf16 %v200_v15, %v200_v15  ;;  %v68_v20 = vrot.slane %v66_v10, 7  ;;  %v827_v25 = vld [vmem:[%s1358_s0 + $0x3c] sm:$0x3]  ;;  %v184_v26 = vpack.c.bf16 %v826_v22, %v826_v22  ;;  %v812_v30 = vld [vmem:[%s1358_s0 + $0x10] sm:$0x3]  ;;  %v991_v39 = vld [vmem:[%s1359_s1 + $0x28] sm:$0xff] }
   0x6   :  { %104 = vrot.lane.b32.xlu1 %v103_v9, %s1027_s23  ;;  %v123_v19 = vrot.slane %v121_v14, 6  ;;  %v154_v24 = vrot.slane %v152_v17, 7  ;;  %v193_v27 = vpack.c.bf16 %v827_v25, %v827_v25  ;;  %v86_v31 = vpack.c.bf16 %v812_v30, %v812_v30  ;;  %v43_v32 = vld [vmem:[%s1358_s0] sm:$0x3]  ;;  %v810_v35 = vld [vmem:[%s1358_s0 + $0x10] sm:$0x3] }
   0x7   :  { %v203_v21 = vrot.slane %v201_v18, 6  ;;  %328 = vmatpush.bf16.msra.mxu0 %v992_v13  ;;  %v186_v28 = vrot.slane %v184_v26, 6  ;;  %v44_v34 = vpack.c.bf16 %v43_v32, %v43_v32  ;;  %v822_v36 = vld [vmem:[%s1358_s0 + $0x30] sm:$0x3]  ;;  %v76_v37 = vpack.c.bf16 %v810_v35, %v810_v35  ;;  %v997_v40 = vld [vmem:[%s1359_s1 + $0x58] sm:$0xff]  ;;  %v990_v41 = vld [vmem:[%s1359_s1 + $0x20] sm:$0xff] }
   0x8   :  { %125 = vst.msk [vmem:[#allocation4 + $0x4] sm:$0x4] %vm90_vm0, %v123_v19  ;;  %v195_v29 = vrot.slane %v193_v27, 5  ;;  %v88_v33 = vrot.slane %v86_v31, 6  ;;  %v161_v38 = vpack.c.bf16 %v822_v36, %v822_v36  ;;  %v818_v42 = vld [vmem:[%s1358_s0 + $0x20] sm:$0x3]  ;;  %345 = vmatpush.bf16.msra.mxu1 %v997_v40 }
   0x9   :  { %205 = vst.msk [vmem:[#allocation4 + $0xc] sm:$0x4] %vm90_vm0, %v203_v21  ;;  %v817_v43 = vld [vmem:[%s1358_s0 + $0x24] sm:$0x3]  ;;  %v134_v45 = vpack.c.bf16 %v818_v42, %v818_v42  ;;  %v813_v48 = vld [vmem:[%s1358_s0 + $0x14] sm:$0x3] }
   0xa   :  { %91 = vst.msk [vmem:[#allocation4] sm:$0x4] %vm90_vm0, %v88_v33  ;;  %v828_v44 = vld [vmem:[%s1358_s0 + $0x5] sm:$0x3]  ;;  %v128_v46 = vpack.c.bf16 %v817_v43, %v817_v43  ;;  %v93_v50 = vpack.c.bf16 %v813_v48, %v813_v48  ;;  %v811_v54 = vld [vmem:[%s1358_s0 + $0x14] sm:$0x3] }
   0xb   :  { %46 = vst.msk [vmem:[#allocation4] sm:$0x1] %vm45_vm1, %v44_v34  ;;  %329 = vmatpush.bf16.msra.mxu0 %v991_v39  ;;  %v207_v47 = vpack.c.bf16 %v828_v44, %v828_v44  ;;  %v807_v49 = vld [vmem:[%s1358_s0 + $0x4] sm:$0x3]  ;;  %v80_v56 = vpack.c.bf16 %v811_v54, %v811_v54  ;;  %v823_v57 = vld [vmem:[%s1358_s0 + $0x34] sm:$0x3] }
   0xc   :  { %69 = vrot.lane.b32.xlu0 %v68_v20, %s1027_s23  ;;  %77 = vst.msk [vmem:[#allocation4 + $0x4] sm:$0x1] %vm45_vm1, %v76_v37  ;;  %v49_v51 = vpack.c.bf16 %v807_v49, %v807_v49  ;;  %v130_v52 = vrot.slane %v128_v46, 5  ;;  %v95_v55 = vrot.slane %v93_v50, 5  ;;  %v165_v59 = vpack.c.bf16 %v823_v57, %v823_v57  ;;  %v996_v60 = vld [vmem:[%s1359_s1 + $0x50] sm:$0xff]  ;;  %v989_v63 = vld [vmem:[%s1359_s1 + $0x18] sm:$0xff] }
   0xd   :  { %155 = vrot.lane.b32.xlu2 %v154_v24, %s1027_s23  ;;  %162 = vst.msk [vmem:[#allocation4 + $0xc] sm:$0x1] %vm45_vm1, %v161_v38  ;;  %v209_v53 = vrot.slane %v207_v47, 5  ;;  %v82_v61 = vrot.slane %v80_v56, 7  ;;  %346 = vmatpush.bf16.msra.mxu1 %v996_v60  ;;  %v995_v1 = vld [vmem:[%s1359_s1 + $0x48] sm:$0xff]  ;;  %v988_v6 = vld [vmem:[%s1359_s1 + $0x10] sm:$0xff] }
   0xe   :  { %114 = vrot.lane.b32.xlu1 %v113_v23, %s1027_s23  ;;  %135 = vst.msk [vmem:[#allocation4 + $0x8] sm:$0x1] %vm45_vm1, %v134_v45  ;;  %v51_v62 = vrot.slane %v49_v51, 7  ;;  %v167_v0 = vrot.slane %v165_v59, 7  ;;  %v819_v2 = vld [vmem:[%s1358_s0 + $0x24] sm:$0x3] }
   0xf   :  { %330 = vmatpush.bf16.msra.mxu0 %v990_v41  ;;  %132 = vst.msk [vmem:[#allocation4 + $0x4] sm:$0x8] %vm97_vm2, %v130_v52  ;;  %v137_v3 = vpack.c.bf16 %v819_v2, %v819_v2  ;;  %v825_v4 = vld [vmem:[%s1358_s0 + $0x34] sm:$0x3]  ;;  %v824_v5 = vld [vmem:[%s1358_s0 + $0x30] sm:$0x3] }
  0x10   :  { %211 = vst.msk [vmem:[#allocation4 + $0xc] sm:$0x8] %vm97_vm2, %v209_v53  ;;  %v177_v7 = vpack.c.bf16 %v825_v4, %v825_v4  ;;  %v171_v8 = vpack.c.bf16 %v824_v5, %v824_v5  ;;  %v994_v13 = vld [vmem:[%s1359_s1 + $0x40] sm:$0xff]  ;;  %v987_v14 = vld [vmem:[%s1359_s1 + $0x8] sm:$0xff]  ;;  %vm323_vm6 = vcmask 523264   ;;  %vm107_vm7 = vcmask 1042946  }
  0x11   :  { %98 = vst.msk [vmem:[#allocation4] sm:$0x8] %vm97_vm2, %v95_v55  ;;  %v139_v9 = vrot.slane %v137_v3, 7  ;;  %347 = vmatpush.bf16.msra.mxu1 %v995_v1  ;;  %v986_v17 = vld [vmem:[%s1359_s1] sm:$0xff]  ;;  %vm117_vm8 = vcmask 1043971   ;;  %vm30_vm9 = vcmask 518144  }
  0x12   :  { %84 = vst.msk [vmem:[#allocation4 + $0x4] sm:$0x2] %vm53_vm4, %v82_v61  ;;  %v179_v10 = vrot.slane %v177_v7, 5  ;;  %v173_v11 = vrot.slane %v171_v8, 6  ;;  %vm364_vm11 = vcmask 517120   ;;  %vm367_vm12 = vcmask 519170  }
  0x13   :  { %331 = vmatpush.bf16.msra.mxu0 %v989_v63  ;;  %169 = vst.msk [vmem:[#allocation4 + $0xc] sm:$0x2] %vm53_vm4, %v167_v0  ;;  %vm370_vm13 = vcmask 521220   ;;  %vm373_vm14 = vcmask 523270  }
  0x14   :  { %187 = vrot.lane.b32.xlu0 %v186_v28, %s1027_s23  ;;  %54 = vst.msk [vmem:[#allocation4] sm:$0x2] %vm53_vm4, %v51_v62  ;;  %v1028_v28 = vmov 0.0  }
  0x15   :  { %141 = vst.msk [vmem:[#allocation4 + $0x8] sm:$0x2] %vm53_vm4, %v139_v9  ;;  %348 = vmatpush.bf16.msra.mxu1 %v994_v13  ;;  %v1003_v13 = vld [vmem:[%s1363_s3 + $0x28] sm:$0xff] }
  0x16   :  { %196 = vrot.lane.b32.xlu1 %v195_v29, %s1027_s23  ;;  %181 = vst.msk [vmem:[#allocation4 + $0x8] sm:$0x8] %vm97_vm2, %v179_v10  ;;  %v1024_v29 = vld [vmem:[%s1360_s2] ss:$0 sm:$0xff] }
  0x17   :  { %332 = vmatpush.bf16.msra.mxu0 %v988_v6  ;;  %175 = vst.msk [vmem:[#allocation4 + $0x8] sm:$0x4] %vm90_vm0, %v173_v11  ;;  %v1005_v11 = vld [vmem:[%s1363_s3 + $0x38] sm:$0xff] }
  0x18   :  { %33 = vst.msk [vmem:[#allocation2 + $0x8] sm:$0x7] %vm30_vm9, %v1028_v28  ;;  %565 = vmatpush.bf16.msra.mxu2 %v1005_v11  ;;  %v1010_v11 = vld [vmem:[%s1364_s5] sm:$0xff] }
  0x19   :  { %v984_v15 = vld [vmem:[#allocation4 + $0x4] sm:$0xf]  ;;  %34 = vst.msk [vmem:[#allocation2 + $0xc] sm:$0x7] %vm30_vm9, %v1028_v28 }
  0x1a   :  { %v833_v16 = vld [vmem:[#allocation4 + $0x8] sm:$0xf0]  ;;  %35 = vst.msk [vmem:[#allocation2 + $0x10] sm:$0x7] %vm30_vm9, %v1028_v28 }
  0x1b   :  { %333 = vmatpush.bf16.msra.mxu0 %v987_v14  ;;  %v836_v18 = vor.u32 %v984_v15, %v833_v16  ;;  %36 = vst.msk [vmem:[#allocation2 + $0x14] sm:$0x7] %vm30_vm9, %v1028_v28  ;;  %v1002_v14 = vld [vmem:[%s1363_s3 + $0x20] sm:$0xff]  ;;  %v1009_v15 = vld [vmem:[%s1363_s3 + $0x58] sm:$0xff] }
  0x1c   :  { %31 = vst.msk [vmem:[#allocation2] sm:$0x7] %vm30_vm9, %v1028_v28  ;;  %v1001_v16 = vld [vmem:[%s1363_s3 + $0x18] sm:$0xff]  ;;  %582 = vmatpush.bf16.msra.mxu3 %v1009_v15 }
  0x1d   :  { %885 = vmatmul.msk.bf16.vlgmr.msra.gmra.mxu1 %vm323_vm6, %v836_v18  ;;  %32 = vst.msk [vmem:[#allocation2 + $0x4] sm:$0x7] %vm30_vm9, %v1028_v28  ;;  %v1000_v18 = vld [vmem:[%s1363_s3 + $0x10] sm:$0xff] }
  0x1e   :  { %37 = vst.msk [vmem:[#allocation2 + $0x18] sm:$0x7] %vm30_vm9, %v1028_v28 }
  0x1f   :  { %334 = vmatpush.bf16.msra.mxu0 %v986_v17  ;;  %38 = vst.msk [vmem:[#allocation2 + $0x1c] sm:$0x7] %vm30_vm9, %v1028_v28 }
  0x20   :  { %39 = vst.msk [vmem:[#allocation3] sm:$0x7] %vm30_vm9, %v1028_v28 }
  0x21   :  { %40 = vst.msk [vmem:[#allocation3 + $0x4] sm:$0x7] %vm30_vm9, %v1028_v28 }
  0x22   :  { %41 = vst.msk [vmem:[#allocation3 + $0x8] sm:$0x7] %vm30_vm9, %v1028_v28 }
  0x23   :  { %42 = vst.msk [vmem:[#allocation3 + $0xc] sm:$0x7] %vm30_vm9, %v1028_v28 }
  0x5f   :  { %v147_v58 = vpop.permute.xlu2 %146 }
  0x60   :  { %149 = vst.msk [vmem:[#allocation4 + $0x8] sm:$0x1] %vm62_vm3, %v147_v58 }
  0x67   :  { %v156_v12 = vpop.permute.xlu2 %155 }
  0x68   :  { %158 = vst.msk [vmem:[#allocation4 + $0x8] sm:$0x2] %vm72_vm5, %v156_v12  ;;  %v1004_v12 = vld [vmem:[%s1363_s3 + $0x30] sm:$0xff] }
  0x69   :  { %566 = vmatpush.bf16.msra.mxu2 %v1004_v12 }
  0x6d   :  { %567 = vmatpush.bf16.msra.mxu2 %v1003_v13 }
  0x71   :  { %568 = vmatpush.bf16.msra.mxu2 %v1002_v14 }
  0x75   :  { %569 = vmatpush.bf16.msra.mxu2 %v1001_v16 }
  0x76   :  { %v60_v19 = vpop.permute.xlu0 %59 }
  0x77   :  { %63 = vst.msk [vmem:[#allocation4] sm:$0x1] %vm62_vm3, %v60_v19  ;;  %v1008_v19 = vld [vmem:[%s1363_s3 + $0x50] sm:$0xff] }
  0x78   :  { %v105_v20 = vpop.permute.xlu1 %104  ;;  %583 = vmatpush.bf16.msra.mxu3 %v1008_v19 }
  0x79   :  { %108 = vst.msk [vmem:[#allocation4] sm:$0x4] %vm107_vm7, %v105_v20  ;;  %v1007_v20 = vld [vmem:[%s1363_s3 + $0x48] sm:$0xff]  ;;  %570 = vmatpush.bf16.msra.mxu2 %v1000_v18  ;;  %v1026_v18 = vld [vmem:[%s1366_s6] ss:$0 sm:$0xff] }
  0x7c   :  { %584 = vmatpush.bf16.msra.mxu3 %v1007_v20 }
  0x7e   :  { %v70_v21 = vpop.permute.xlu0 %69 }
  0x7f   :  { %73 = vst.msk [vmem:[#allocation4] sm:$0x2] %vm72_vm5, %v70_v21  ;;  %v999_v21 = vld [vmem:[%s1363_s3 + $0x8] sm:$0xff] }
  0x80   :  { %v115_v22 = vpop.permute.xlu1 %114  ;;  %571 = vmatpush.bf16.msra.mxu2 %v999_v21 }
  0x81   :  { %118 = vst.msk [vmem:[#allocation4] sm:$0x8] %vm117_vm8, %v115_v22  ;;  %v1006_v22 = vld [vmem:[%s1363_s3 + $0x40] sm:$0xff] }
  0x82   :  { %585 = vmatpush.bf16.msra.mxu3 %v1006_v22 }
  0x86   :  { %v188_v23 = vpop.permute.xlu0 %187 }
  0x87   :  { %190 = vst.msk [vmem:[#allocation4 + $0x8] sm:$0x4] %vm107_vm7, %v188_v23  ;;  %v998_v23 = vld [vmem:[%s1363_s3] sm:$0xff] }
  0x88   :  { %v197_v24 = vpop.permute.xlu1 %196  ;;  %v831_v25 = vld [vmem:[#allocation4] sm:$0xf]  ;;  %572 = vmatpush.bf16.msra.mxu2 %v998_v23 }
  0x89   :  { %199 = vst.msk [vmem:[#allocation4 + $0x8] sm:$0x8] %vm117_vm8, %v197_v24 }
  0x90   :  { %v985_v26 = vld [vmem:[#allocation4 + $0x4] sm:$0xf0] }
  0x91   :  { %v832_v27 = vor.u32 %v985_v26, %v831_v25 }
  0x93   :  { %335 = vmatmul.bf16.vlgmr.msra.gmra.mxu0 %v832_v27 }
  0x9a   :  { %v350_v30 = vpop.f32.mrf.mxu1 }
  0xa2   :  { %v352_v38 = vpop.f32.mrf.mxu1 }
 0x110   :  { %v336_v31 = vpop.f32.mrf.mxu0 }
 0x111   :  { %v337_v32 = vadd.f32 %v1024_v29, %v336_v31 }
 0x113   :  { %v351_v33 = vadd.f32 %v350_v30, %v337_v32  ;;  %v1017_v32 = vld [vmem:[%s1364_s5 + $0x38] sm:$0xff] }
 0x114   :  { %764 = vmatpush.bf16.msrb.mxu1 %v1017_v32 }
 0x115   :  { %vm355_vm10 = vcmp.ge.f32.partialorder %v351_v33, 0.0  ;;  %v357_v34 = vmul.f32 0.1, %v351_v33 }
 0x117   :  { %v359_v35 = vsel %vm355_vm10, %v351_v33, %v357_v34  ;;  %v1025_v33 = vld [vmem:[%s1362_s4] ss:$0 sm:$0xff]  ;;  %v1016_v34 = vld [vmem:[%s1364_s5 + $0x30] sm:$0xff] }
 0x118   :  { %361 = vst.msk [vmem:[%s1361_s7] sm:$0xff] %vm323_vm6, %v359_v35  ;;  %v338_v36 = vpop.f32.mrf.mxu0  ;;  %765 = vmatpush.bf16.msrb.mxu1 %v1016_v34 }
 0x119   :  { %365 = vst.msk [vmem:[#allocation2 + $0x8] sm:$0x3] %vm364_vm11, %v359_v35  ;;  %v339_v37 = vadd.f32 %v1024_v29, %v338_v36 }
 0x11a   :  { %368 = vst.msk [vmem:[#allocation2 + $0xa] sm:$0xc] %vm367_vm12, %v359_v35 }
 0x11b   :  { %371 = vst.msk [vmem:[#allocation2 + $0xc] sm:$0x30] %vm370_vm13, %v359_v35  ;;  %v353_v39 = vadd.f32 %v352_v38, %v339_v37  ;;  %v1015_v38 = vld [vmem:[%s1364_s5 + $0x28] sm:$0xff] }
 0x11c   :  { %374 = vst.msk [vmem:[#allocation2 + $0xe] sm:$0xc0] %vm373_vm14, %v359_v35  ;;  %766 = vmatpush.bf16.msrb.mxu1 %v1015_v38 }
 0x11d   :  { %vm356_vm15 = vcmp.ge.f32.partialorder %v353_v39, 0.0  ;;  %v358_v40 = vmul.f32 0.1, %v353_v39 }
 0x11f   :  { %v360_v41 = vsel %vm356_vm15, %v353_v39, %v358_v40 }
 0x120   :  { %362 = vst.msk [vmem:[%s1361_s7 + $0x8] sm:$0xff] %vm323_vm6, %v360_v41  ;;  %v391_v42 = vld [vmem:[#allocation2 + $0x8] sm:$0x3] }
 0x121   :  { %376 = vst.msk [vmem:[#allocation2 + $0x18] sm:$0x3] %vm364_vm11, %v360_v41  ;;  %v392_v43 = vpack.c.bf16 %v391_v42, %v391_v42  ;;  %v398_v44 = vld [vmem:[#allocation2 + $0xc] sm:$0x3] }
 0x122   :  { %378 = vst.msk [vmem:[#allocation2 + $0x1a] sm:$0xc] %vm367_vm12, %v360_v41  ;;  %v399_v45 = vpack.c.bf16 %v398_v44, %v398_v44  ;;  %v415_v46 = vld [vmem:[#allocation2 + $0x10] sm:$0x3] }
 0x123   :  { %v406_v47 = vld [vmem:[#allocation2 + $0x10] sm:$0x3]  ;;  %379 = vst.msk [vmem:[#allocation2 - $0x3] sm:$0x30] %vm370_vm13, %v360_v41  ;;  %394 = vrot.lane.b32.xlu2 %v392_v43, %s1027_s23  ;;  %v421_v48 = vld [vmem:[#allocation2 + $0x14] sm:$0x3]  ;;  %v416_v49 = vpack.c.bf16 %v415_v46, %v415_v46 }
 0x124   :  { %v407_v50 = vpack.c.bf16 %v406_v47, %v406_v47  ;;  %v409_v51 = vld [vmem:[#allocation2 + $0x14] sm:$0x3]  ;;  %381 = vst.msk [vmem:[#allocation2 - $0x1] sm:$0xc0] %vm373_vm14, %v360_v41  ;;  %v401_v52 = vrot.slane %v399_v45, 7  ;;  %v422_v53 = vpack.c.bf16 %v421_v48, %v421_v48  ;;  %v1014_v41 = vld [vmem:[%s1364_s5 + $0x20] sm:$0xff] }
 0x125   :  { %v410_v54 = vpack.c.bf16 %v409_v51, %v409_v51  ;;  %v418_v55 = vrot.slane %v416_v49, 6  ;;  %767 = vmatpush.bf16.msrb.mxu1 %v1014_v41 }
 0x126   :  { %408 = vst.msk [vmem:[#allocation5 + $0x4] sm:$0x1] %vm45_vm1, %v407_v50  ;;  %402 = vrot.lane.b32.xlu0 %v401_v52, %s1027_s23  ;;  %v424_v56 = vrot.slane %v422_v53, 5 }
 0x127   :  { %v412_v57 = vrot.slane %v410_v54, 7  ;;  %420 = vst.msk [vmem:[#allocation5] sm:$0x4] %vm90_vm0, %v418_v55 }
 0x128   :  { %v427_v58 = vld [vmem:[#allocation2 + $0x18] sm:$0x3]  ;;  %426 = vst.msk [vmem:[#allocation5] sm:$0x8] %vm97_vm2, %v424_v56 }
 0x129   :  { %v428_v59 = vpack.c.bf16 %v427_v58, %v427_v58  ;;  %v435_v60 = vld [vmem:[#allocation2 + $0x1c] sm:$0x3]  ;;  %414 = vst.msk [vmem:[#allocation5 + $0x4] sm:$0x2] %vm53_vm4, %v412_v57 }
 0x12a   :  { %v436_v61 = vpack.c.bf16 %v435_v60, %v435_v60  ;;  %v382_v62 = vld [vmem:[#allocation2] sm:$0x3] }
 0x12b   :  { %v443_v63 = vld [vmem:[#allocation2 + $0x1] sm:$0x3]  ;;  %v430_v0 = vrot.slane %v428_v59, 6  ;;  %v383_v1 = vpack.c.bf16 %v382_v62, %v382_v62  ;;  %v385_v2 = vld [vmem:[#allocation2 + $0x4] sm:$0x3] }
 0x12c   :  { %v444_v3 = vpack.c.bf16 %v443_v63, %v443_v63  ;;  %v449_v4 = vld [vmem:[#allocation2 + $0x5] sm:$0x3]  ;;  %v438_v5 = vrot.slane %v436_v61, 5  ;;  %v386_v6 = vpack.c.bf16 %v385_v2, %v385_v2 }
 0x12d   :  { %v450_v7 = vpack.c.bf16 %v449_v4, %v449_v4  ;;  %431 = vrot.lane.b32.xlu1 %v430_v0, %s1027_s23  ;;  %384 = vst.msk [vmem:[#allocation5] sm:$0x1] %vm45_vm1, %v383_v1  ;;  %v1021_v4 = vld [vmem:[%s1364_s5 + $0x58] sm:$0xff] }
 0x12e   :  { %v446_v8 = vrot.slane %v444_v3, 6  ;;  %439 = vrot.lane.b32.xlu2 %v438_v5, %s1027_s23  ;;  %v388_v9 = vrot.slane %v386_v6, 7  ;;  %v1013_v5 = vld [vmem:[%s1364_s5 + $0x18] sm:$0xff]  ;;  %781 = vmatpush.bf16.msrb.mxu3 %v1021_v4  ;;  %v1020_v6 = vld [vmem:[%s1364_s5 + $0x50] sm:$0xff] }
 0x12f   :  { %v452_v10 = vrot.slane %v450_v7, 5  ;;  %768 = vmatpush.bf16.msrb.mxu1 %v1013_v5  ;;  %v1012_v7 = vld [vmem:[%s1364_s5 + $0x10] sm:$0xff] }
 0x130   :  { %448 = vst.msk [vmem:[#allocation5 + $0x4] sm:$0x4] %vm90_vm0, %v446_v8  ;;  %v1019_v8 = vld [vmem:[%s1364_s5 + $0x48] sm:$0xff] }
 0x131   :  { %390 = vst.msk [vmem:[#allocation5] sm:$0x2] %vm53_vm4, %v388_v9  ;;  %v1011_v9 = vld [vmem:[%s1364_s5 + $0x8] sm:$0xff] }
 0x132   :  { %454 = vst.msk [vmem:[#allocation5 + $0x4] sm:$0x8] %vm97_vm2, %v452_v10  ;;  %vm609_vm2 = vcmask 1041408   ;;  %782 = vmatpush.bf16.msrb.mxu3 %v1020_v6  ;;  %v1018_v10 = vld [vmem:[%s1364_s5 + $0x40] sm:$0xff] }
 0x133   :  { %769 = vmatpush.bf16.msrb.mxu1 %v1012_v7 }
 0x136   :  { %783 = vmatpush.bf16.msrb.mxu3 %v1019_v8 }
 0x137   :  { %770 = vmatpush.bf16.msrb.mxu1 %v1011_v9 }
 0x13a   :  { %784 = vmatpush.bf16.msrb.mxu3 %v1018_v10 }
 0x13b   :  { %771 = vmatpush.bf16.msrb.mxu1 %v1010_v11 }
 0x17d   :  { %v395_v17 = vpop.permute.xlu2 %394 }
 0x17e   :  { %397 = vst.msk [vmem:[#allocation5] sm:$0x1] %vm62_vm3, %v395_v17 }
 0x188   :  { %v440_v24 = vpop.permute.xlu2 %439 }
 0x189   :  { %442 = vst.msk [vmem:[#allocation5] sm:$0x8] %vm117_vm8, %v440_v24 }
 0x198   :  { %v403_v25 = vpop.permute.xlu0 %402 }
 0x199   :  { %405 = vst.msk [vmem:[#allocation5] sm:$0x2] %vm72_vm5, %v403_v25 }
 0x19f   :  { %v432_v26 = vpop.permute.xlu1 %431 }
 0x1a0   :  { %434 = vst.msk [vmem:[#allocation5] sm:$0x4] %vm107_vm7, %v432_v26 }
 0x1a7   :  { %v455_v27 = vld [vmem:[#allocation5] sm:$0xff] }
 0x1a8   :  { %v485_v28 = vunpack.c.l.b16 %v455_v27  ;;  %v486_v29 = vunpack.c.h.b16 %v455_v27 }
 0x1aa   :  { %v487_v30 = vpack.c.b16 %v485_v28, %v485_v28  ;;  %v488_v31 = vpack.c.b16 %v486_v29, %v486_v29 }
 0x1ac   :  { %573 = vmatmul.bf16.vlgmr.msra.gmra.mxu2 %v487_v30  ;;  %934 = vmatmul.msk.bf16.vlgmr.msra.gmra.mxu3 %vm323_vm6, %v488_v31 }
 0x22f   :  { %v574_v35 = vpop.f32.mrf.mxu2  ;;  %v587_v36 = vpop.f32.mrf.mxu3 }
 0x230   :  { %v575_v37 = vadd.f32 %v1025_v33, %v574_v35 }
 0x232   :  { %v588_v39 = vadd.f32 %v587_v36, %v575_v37 }
 0x234   :  { %vm591_vm0 = vcmp.ge.f32.partialorder %v588_v39, 0.0  ;;  %v592_v40 = vmul.f32 0.1, %v588_v39 }
 0x236   :  { %v593_v42 = vsel %vm591_vm0, %v588_v39, %v592_v40 }
 0x237   :  { %594 = vst.msk [vmem:[%s1365_s8] sm:$0xff] %vm323_vm6, %v593_v42  ;;  %v576_v43 = vpop.f32.mrf.mxu2  ;;  %v589_v44 = vpop.f32.mrf.mxu3 }
 0x238   :  { %596 = vst.msk [vmem:[#allocation3 + $0x8] sm:$0x3] %vm364_vm11, %v593_v42 }
 0x239   :  { %598 = vst.msk [vmem:[#allocation3 + $0xa] sm:$0xc] %vm367_vm12, %v593_v42 }
 0x23a   :  { %599 = vst.msk [vmem:[#allocation3 - $0x3] sm:$0x30] %vm370_vm13, %v593_v42 }
 0x23b   :  { %601 = vst.msk [vmem:[#allocation3 - $0x1] sm:$0xc0] %vm373_vm14, %v593_v42 }
 0x23f   :  { %v617_v45 = vld [vmem:[#allocation3 + $0x8] sm:$0x3] }
 0x240   :  { %v618_v46 = vpack.c.bf16 %v617_v45, %v617_v45  ;;  %v629_v47 = vld [vmem:[#allocation3 + $0xc] sm:$0x3] }
 0x241   :  { %v642_v48 = vld [vmem:[#allocation3 + $0x1] sm:$0x3]  ;;  %v630_v49 = vpack.c.bf16 %v629_v47, %v629_v47 }
 0x242   :  { %v602_v50 = vld [vmem:[#allocation3] sm:$0x3]  ;;  %v643_v51 = vpack.c.bf16 %v642_v48, %v642_v48  ;;  %v620_v52 = vrot.slane %v618_v46, 2  ;;  %v645_v53 = vld [vmem:[#allocation3 + $0x5] sm:$0x3] }
 0x243   :  { %v603_v54 = vpack.c.bf16 %v602_v50, %v602_v50  ;;  %v605_v55 = vld [vmem:[#allocation3 + $0x4] sm:$0x3]  ;;  %v646_v56 = vpack.c.bf16 %v645_v53, %v645_v53  ;;  %v632_v57 = vrot.slane %v630_v49, 2 }
 0x244   :  { %v606_v58 = vpack.c.bf16 %v605_v55, %v605_v55  ;;  %644 = vst.msk [vmem:[#allocation6 + $0x2] sm:$0x1] %vm45_vm1, %v643_v51  ;;  %v623_v59 = vsel %vm609_vm2, %v618_v46, %v620_v52 }
 0x245   :  { %v648_v60 = vrot.slane %v646_v56, 2  ;;  %625 = vrot.lane.b32.xlu0 %v623_v59, %s1027_s23  ;;  %v635_v61 = vsel %vm609_vm2, %v630_v49, %v632_v57  ;;  %604 = vst.msk [vmem:[#allocation6] sm:$0x1] %vm45_vm1, %v603_v54 }
 0x246   :  { %v608_v62 = vrot.slane %v606_v58, 2  ;;  %v637_v63 = vrot.slane %v635_v61, 7 }
 0x247   :  { %v651_v0 = vsel %vm609_vm2, %v646_v56, %v648_v60 }
 0x248   :  { %v612_v1 = vsel %vm609_vm2, %v606_v58, %v608_v62  ;;  %v653_v2 = vrot.slane %v651_v0, 7  ;;  %638 = vrot.lane.b32.xlu1 %v637_v63, %s1027_s23 }
 0x249   :  { %v614_v3 = vrot.slane %v612_v1, 7 }
 0x24a   :  { %655 = vst.msk [vmem:[#allocation6 + $0x2] sm:$0x2] %vm53_vm4, %v653_v2 }
 0x24b   :  { %616 = vst.msk [vmem:[#allocation6] sm:$0x2] %vm53_vm4, %v614_v3 }
 0x2b7   :  { %v626_v12 = vpop.permute.xlu0 %625 }
 0x2b8   :  { %628 = vst.msk [vmem:[#allocation6] sm:$0x1] %vm62_vm3, %v626_v12  ;;  %vm793_vm3 = vcmask 519168  }
 0x2ba   :  { %v639_v13 = vpop.permute.xlu1 %638 }
 0x2bb   :  { %641 = vst.msk [vmem:[#allocation6] sm:$0x2] %vm72_vm5, %v639_v13 }
 0x2c2   :  { %v656_v14 = vld [vmem:[#allocation6] sm:$0xf] }
 0x2c3   :  { %686 = vst [vmem:[#allocation1] ss:$4 sm:$0xff] %v656_v14 }
 0x2ca   :  { %v687_v15 = vld.sshfl [vmem:[#allocation1] sm:$0xff pattern:$0x73625140]  ;;  %v688_v16 = vld.sshfl [vmem:[#allocation1 + $0x8] sm:$0xff pattern:$0x73625140] }
 0x2cb   :  { %772 = vmatmul.bf16.vlgmr.msrb.gmra.mxu1 %v687_v15  ;;  %983 = vmatmul.msk.bf16.vlgmr.msrb.gmra.mxu3 %vm323_vm6, %v688_v16 }
 0x348   :  { %v773_v17 = vpop.f32.mrf.mxu1 }
 0x349   :  { %v774_v19 = vadd.f32 %v1026_v18, %v773_v17 }
 0x34e   :  { %v786_v20 = vpop.f32.mrf.mxu3 }
 0x34f   :  { %v787_v21 = vadd.f32 %v786_v20, %v774_v19 }
 0x350   :  { %v775_v22 = vpop.f32.mrf.mxu1 }
 0x351   :  { %vm790_vm1 = vcmp.ge.f32.partialorder %v787_v21, 0.0  ;;  %v791_v23 = vmul.f32 0.1, %v787_v21 }
 0x353   :  { %v792_v24 = vsel %vm790_vm1, %v787_v21, %v791_v23 }
 0x354   :  { %794 = vst.msk [vmem:[%s1367_s9] sm:$0xf] %vm793_vm3, %v792_v24 }
 0x356   :  { %v788_v25 = vpop.f32.mrf.mxu3 }

</bundles_post_ra>
